<compile_context>
chip_gen: v5e
topology: v5e:2x2
jax: 0.10.0
libtpu: 0.0.40
codegen_flags: <defaults>
</compile_context>

<pallas_src>
import jax
import jax.numpy as jnp
from jax.experimental import pallas as pl
from jax.experimental.pallas import tpu as pltpu


def _round_up(x, m):
    return (x + m - 1) // m * m


def _bn_relu(x, gamma, beta, eps=1e-5):
    """Training-mode BatchNorm1d (batch mean, biased variance, eps=1e-5),
    folded into y = x * scale + offset, followed by ReLU.

    Single-pass statistics: E[x] and E[x^2] computed together, then
    var = E[x^2] - E[x]^2 — one fewer sublane reduction / broadcast per BN.
    gamma/beta are (1, F) rows; rsqrt goes to the EUP slot."""
    inv_n = 1.0 / x.shape[0]
    s1 = jnp.sum(x, axis=0, keepdims=True)
    s2 = jnp.sum(x * x, axis=0, keepdims=True)
    mean = s1 * inv_n
    var = s2 * inv_n - mean * mean
    scale = gamma * jax.lax.rsqrt(var + eps)
    offset = beta - mean * scale
    return jnp.maximum(x * scale + offset, 0.0)


def critic_kernel(state_ref, action_ref, w1_ref, pack_ref, w2s_hbm_ref,
                  out_ref, w2s_vmem, dma_sem):
    # Start the dominant w2s DMA (HBM -> VMEM) immediately so it overlaps with
    # the whole fcs1 + bn1 + relu stage.
    w2s_cp = pltpu.make_async_copy(w2s_hbm_ref, w2s_vmem, dma_sem)
    w2s_cp.start()

    F2p = w2s_vmem.shape[1]
    A = action_ref.shape[1]

    # ---- fcs1 (no bias) + bn1 + relu (native bf16 MXU, f32 accumulate) ----
    h1 = jnp.dot(state_ref[...], w1_ref[...],
                 preferred_element_type=jnp.float32)
    xs = _bn_relu(h1, pack_ref[0:1, :], pack_ref[1:2, :])

    # ---- fc2 over concat([xs, action]) == xs @ W2s + action @ W2a ---------
    w2s_cp.wait()
    h2 = jnp.dot(xs.astype(jnp.bfloat16), w2s_vmem[...],
                 preferred_element_type=jnp.float32)
    # K = action_size (tiny): broadcast FMAs on the VPU instead of a
    # degenerate MXU matmul.  w2a rows live at pack[6 + a, :F2p].
    for a in range(A):
        h2 = h2 + action_ref[:, a:a + 1] * pack_ref[6 + a:7 + a, :F2p]
    x2 = _bn_relu(h2, pack_ref[2:3, :F2p], pack_ref[3:4, :F2p])

    # ---- fc3 (N=1, with bias): VPU multiply + lane reduction --------------
    q = jnp.sum(x2 * pack_ref[4:5, :F2p], axis=1, keepdims=True)   # (B, 1)
    # Lane-dense store: broadcast across 128 lanes, add the replicated bias
    # row; wrapper slices [:, :1].
    B, L = out_ref.shape
    q_dense = jnp.broadcast_to(q, (B, L)) + pack_ref[5:6, 0:L]
    out_ref[...] = q_dense.astype(out_ref.dtype)


def critic_forward(state, action, params):
    """Run the Critic forward pass with a single whole-array Pallas kernel."""
    B, S = state.shape
    Kp = params["w1"].shape[0]
    F1p, F2p = params["w2s"].shape

    # Lane-pad state to Kp (=128) and cast to bf16 -> unmasked loads, native
    # bf16 LHS for matmul1, and half the state DMA bytes.
    state_p = (jnp.zeros((B, Kp), jnp.bfloat16)
               .at[:, :S].set(state.astype(jnp.bfloat16)))

    inputs = (state_p, action, params["w1"], params["pack"], params["w2s"])
    in_specs = [
        pl.BlockSpec(state_p.shape, lambda: (0, 0)),
        pl.BlockSpec(action.shape, lambda: (0, 0)),
        pl.BlockSpec(params["w1"].shape, lambda: (0, 0)),
        pl.BlockSpec(params["pack"].shape, lambda: (0, 0)),
        pl.BlockSpec(memory_space=pl.ANY),   # w2s stays in HBM; kernel DMAs it
    ]
    out_spec = pl.BlockSpec((B, 128), lambda: (0, 0))

    out = pl.pallas_call(
        critic_kernel,
        out_shape=jax.ShapeDtypeStruct((B, 128), jnp.float32),
        in_specs=in_specs,
        out_specs=out_spec,
        scratch_shapes=[
            pltpu.VMEM((F1p, F2p), jnp.bfloat16),   # w2s landing buffer
            pltpu.SemaphoreType.DMA(()),
        ],
    )(*inputs)
    return out[:, :1]


def init_critic_params(key, state_size, action_size,
                       fcs1_units=400, fc2_units=300):
    """Deterministic init mirroring the PyTorch module's reset_parameters().

    hidden_init() in the reference uses weight.size()[0] (= out_features) as
    the fan-in; we reproduce that convention for the uniform limits.
    Dims are zero-padded to lane multiples (K 24->128, F1 400->512,
    F2 300->384) and the small per-feature parameters are packed into one
    slab.  NOTE: if loading a trained PyTorch checkpoint later, the padded
    rows/columns (and gamma/beta padding) must be re-zeroed.
    """
    Kp = _round_up(state_size, 128)
    F1p = _round_up(fcs1_units, 128)
    F2p = _round_up(fc2_units, 128)

    k1, k2, k3, k4 = jax.random.split(key, 4)
    lim1 = 1.0 / (fcs1_units ** 0.5)
    lim2 = 1.0 / (fc2_units ** 0.5)
    lim3 = 0.003
    lim3b = 1.0 / (fc2_units ** 0.5)   # default PyTorch Linear bias init

    w1 = jax.random.uniform(k1, (state_size, fcs1_units), jnp.float32,
                            -lim1, lim1)
    w2 = jax.random.uniform(k2, (fcs1_units + action_size, fc2_units),
                            jnp.float32, -lim2, lim2)
    w3 = jax.random.uniform(k3, (fc2_units,), jnp.float32, -lim3, lim3)
    b3 = jax.random.uniform(k4, (), jnp.float32, -lim3b, lim3b)

    # Lane-aligned zero padding.  Padded columns/rows are exactly zero so they
    # stay zero through BN (gamma_pad = beta_pad = 0) + ReLU and contribute
    # nothing downstream.
    w1p = (jnp.zeros((Kp, F1p), jnp.float32)
           .at[:state_size, :fcs1_units].set(w1))
    w2sp = (jnp.zeros((F1p, F2p), jnp.float32)
            .at[:fcs1_units, :fc2_units].set(w2[:fcs1_units]))
    w2ap = (jnp.zeros((action_size, F2p), jnp.float32)
            .at[:, :fc2_units].set(w2[fcs1_units:]))
    w3p = jnp.zeros((F2p,), jnp.float32).at[:fc2_units].set(w3)

    g1 = jnp.zeros((F1p,), jnp.float32).at[:fcs1_units].set(1.0)
    be1 = jnp.zeros((F1p,), jnp.float32)
    g2 = jnp.zeros((F2p,), jnp.float32).at[:fc2_units].set(1.0)
    be2 = jnp.zeros((F2p,), jnp.float32)

    def pad_row(r):
        return jnp.zeros((F1p,), jnp.float32).at[:r.shape[0]].set(r)

    # Single f32 slab, lane dim F1p; rows:
    #   0: gamma1   1: beta1   2: gamma2   3: beta2   4: w3   5: b3 (replicated)
    #   6..6+A-1: action-side W2 rows
    pack = jnp.stack(
        [g1, be1, pad_row(g2), pad_row(be2), pad_row(w3p),
         jnp.full((F1p,), b3, jnp.float32)]
        + [pad_row(w2ap[a]) for a in range(action_size)], axis=0)

    return {
        "w1": w1p.astype(jnp.bfloat16),    # bf16 weights: half the DMA bytes
        "w2s": w2sp.astype(jnp.bfloat16),  # dominant operand, DMA'd manually
        "pack": pack,                      # f32 small-parameter slab
    }


def critic_reference(state, action, params):
    """Pure-JAX reference following the exact same dtype/packing plan."""
    B, S = state.shape
    Kp = params["w1"].shape[0]
    F2p = params["w2s"].shape[1]
    A = action.shape[1]
    pack = params["pack"]

    state_p = (jnp.zeros((B, Kp), jnp.bfloat16)
               .at[:, :S].set(state.astype(jnp.bfloat16)))
    h1 = jnp.dot(state_p, params["w1"], preferred_element_type=jnp.float32)
    xs = _bn_relu(h1, pack[0:1, :], pack[1:2, :])
    h2 = jnp.dot(xs.astype(jnp.bfloat16), params["w2s"],
                 preferred_element_type=jnp.float32)
    h2 = h2 + action @ pack[6:6 + A, :F2p]
    x2 = _bn_relu(h2, pack[2:3, :F2p], pack[3:4, :F2p])
    q = jnp.sum(x2 * pack[4:5, :F2p], axis=1, keepdims=True) + pack[5:6, 0:1]
    return q


if __name__ == "__main__":
    # Small shapes consistent with the module (e.g. Tennis: state=24, action=2)
    B, STATE, ACTION = 8, 24, 2
    FCS1, FC2 = 400, 300

    key = jax.random.PRNGKey(0)
    kp, ks, ka = jax.random.split(key, 3)
    params = init_critic_params(kp, STATE, ACTION, FCS1, FC2)
    state = jax.random.normal(ks, (B, STATE), jnp.float32)
    action = jax.random.uniform(ka, (B, ACTION), jnp.float32, -1.0, 1.0)

    q = critic_forward(state, action, params)
    q = jax.block_until_ready(q)

    q_ref = critic_reference(state, action, params)
    assert q.shape == (B, 1)
    assert jnp.allclose(q, q_ref, atol=1e-2, rtol=1e-2), (q, q_ref)

    print("KERNEL_OK")
</pallas_src>

<mosaic_0001>
module attributes {stable_mosaic.version = 11 : i64} {
  func.func @critic_kernel(%arg0: memref<8x128xbf16, #tpu.memory_space<vmem>>, %arg1: memref<8x2xf32, #tpu.memory_space<vmem>>, %arg2: memref<128x512xbf16, #tpu.memory_space<vmem>>, %arg3: memref<8x512xf32, #tpu.memory_space<vmem>>, %arg4: memref<512x384xbf16, #tpu.memory_space<any>>, %arg5: memref<8x128xf32, #tpu.memory_space<vmem>>, %arg6: memref<512x384xbf16, #tpu.memory_space<vmem>>, %arg7: memref<!tpu.dma_semaphore, #tpu.memory_space<semaphore_mem>>) attributes {dimension_semantics = [], scalar_prefetch = 0 : i64, scratch_operands = 2 : i64, tpu.core_type = #tpu.core_type<tc>} {
    tpu.enqueue_dma source(%arg4 : memref<512x384xbf16, #tpu.memory_space<any>>) target(%arg6 : memref<512x384xbf16, #tpu.memory_space<vmem>>) target_semaphore(%arg7 : memref<!tpu.dma_semaphore, #tpu.memory_space<semaphore_mem>>)
    %c0 = arith.constant 0 : index
    %c0_0 = arith.constant 0 : index
    %0 = vector.load %arg0[%c0, %c0_0] : memref<8x128xbf16, #tpu.memory_space<vmem>>, vector<8x128xbf16>
    %c0_1 = arith.constant 0 : index
    %c0_2 = arith.constant 0 : index
    %1 = vector.load %arg2[%c0_1, %c0_2] : memref<128x512xbf16, #tpu.memory_space<vmem>>, vector<128x512xbf16>
    %cst = arith.constant dense<0.000000e+00> : vector<8x512xf32>
    %2 = tpu.matmul %0, %1, %cst {dimension_numbers = #tpu.dot_dimension_numbers<[1], [0], [0], [1], [0, 0, 1, 1], [], []>} : vector<8x128xbf16>, vector<128x512xbf16>, vector<8x512xf32> -> vector<8x512xf32>
    %c0_3 = arith.constant 0 : index
    %c0_4 = arith.constant 0 : index
    %3 = vector.load %arg3[%c0_3, %c0_4] : memref<8x512xf32, #tpu.memory_space<vmem>>, vector<1x512xf32>
    %c1 = arith.constant 1 : index
    %c0_5 = arith.constant 0 : index
    %4 = vector.load %arg3[%c1, %c0_5] : memref<8x512xf32, #tpu.memory_space<vmem>>, vector<1x512xf32>
    %cst_6 = arith.constant dense<0.000000e+00> : vector<512xf32>
    %5 = vector.multi_reduction <add>, %2, %cst_6 [0] : vector<8x512xf32> to vector<512xf32>
    %6 = vector.shape_cast %5 : vector<512xf32> to vector<1x512xf32>
    %7 = arith.mulf %2, %2 : vector<8x512xf32>
    %cst_7 = arith.constant dense<0.000000e+00> : vector<512xf32>
    %8 = vector.multi_reduction <add>, %7, %cst_7 [0] : vector<8x512xf32> to vector<512xf32>
    %9 = vector.shape_cast %8 : vector<512xf32> to vector<1x512xf32>
    %cst_8 = arith.constant 1.250000e-01 : f32
    %10 = vector.broadcast %cst_8 : f32 to vector<1x512xf32>
    %11 = arith.mulf %6, %10 : vector<1x512xf32>
    %cst_9 = arith.constant 1.250000e-01 : f32
    %12 = vector.broadcast %cst_9 : f32 to vector<1x512xf32>
    %13 = arith.mulf %9, %12 : vector<1x512xf32>
    %14 = arith.mulf %11, %11 : vector<1x512xf32>
    %15 = arith.subf %13, %14 : vector<1x512xf32>
    %cst_10 = arith.constant 9.99999974E-6 : f32
    %16 = vector.broadcast %cst_10 : f32 to vector<1x512xf32>
    %17 = arith.addf %15, %16 : vector<1x512xf32>
    %18 = math.rsqrt %17 : vector<1x512xf32>
    %19 = arith.mulf %3, %18 : vector<1x512xf32>
    %20 = arith.mulf %11, %19 : vector<1x512xf32>
    %21 = arith.subf %4, %20 : vector<1x512xf32>
    %22 = vector.broadcast %19 : vector<1x512xf32> to vector<8x512xf32>
    %23 = arith.mulf %2, %22 : vector<8x512xf32>
    %24 = vector.broadcast %21 : vector<1x512xf32> to vector<8x512xf32>
    %25 = arith.addf %23, %24 : vector<8x512xf32>
    %cst_11 = arith.constant 0.000000e+00 : f32
    %26 = vector.broadcast %cst_11 : f32 to vector<8x512xf32>
    %27 = arith.maximumf %25, %26 : vector<8x512xf32>
    tpu.wait_dma2 semaphore(%arg7 : memref<!tpu.dma_semaphore, #tpu.memory_space<semaphore_mem>>) src(%arg4 : memref<512x384xbf16, #tpu.memory_space<any>>) dst(%arg6 : memref<512x384xbf16, #tpu.memory_space<vmem>>)
    %28 = arith.truncf %27 : vector<8x512xf32> to vector<8x512xbf16>
    %c0_12 = arith.constant 0 : index
    %c0_13 = arith.constant 0 : index
    %29 = vector.load %arg6[%c0_12, %c0_13] : memref<512x384xbf16, #tpu.memory_space<vmem>>, vector<512x384xbf16>
    %cst_14 = arith.constant dense<0.000000e+00> : vector<8x384xf32>
    %30 = tpu.matmul %28, %29, %cst_14 {dimension_numbers = #tpu.dot_dimension_numbers<[1], [0], [0], [1], [0, 0, 1, 1], [], []>} : vector<8x512xbf16>, vector<512x384xbf16>, vector<8x384xf32> -> vector<8x384xf32>
    %c0_15 = arith.constant 0 : index
    %c0_16 = arith.constant 0 : index
    %31 = vector.load %arg1[%c0_15, %c0_16] : memref<8x2xf32, #tpu.memory_space<vmem>>, vector<8x1xf32>
    %c6 = arith.constant 6 : index
    %c0_17 = arith.constant 0 : index
    %32 = vector.load %arg3[%c6, %c0_17] : memref<8x512xf32, #tpu.memory_space<vmem>>, vector<1x384xf32>
    %33 = vector.broadcast %31 : vector<8x1xf32> to vector<8x384xf32>
    %34 = vector.broadcast %32 : vector<1x384xf32> to vector<8x384xf32>
    %35 = arith.mulf %33, %34 : vector<8x384xf32>
    %36 = arith.addf %30, %35 : vector<8x384xf32>
    %c0_18 = arith.constant 0 : index
    %c1_19 = arith.constant 1 : index
    %37 = vector.load %arg1[%c0_18, %c1_19] : memref<8x2xf32, #tpu.memory_space<vmem>>, vector<8x1xf32>
    %c7 = arith.constant 7 : index
    %c0_20 = arith.constant 0 : index
    %38 = vector.load %arg3[%c7, %c0_20] : memref<8x512xf32, #tpu.memory_space<vmem>>, vector<1x384xf32>
    %39 = vector.broadcast %37 : vector<8x1xf32> to vector<8x384xf32>
    %40 = vector.broadcast %38 : vector<1x384xf32> to vector<8x384xf32>
    %41 = arith.mulf %39, %40 : vector<8x384xf32>
    %42 = arith.addf %36, %41 : vector<8x384xf32>
    %c2 = arith.constant 2 : index
    %c0_21 = arith.constant 0 : index
    %43 = vector.load %arg3[%c2, %c0_21] : memref<8x512xf32, #tpu.memory_space<vmem>>, vector<1x384xf32>
    %c3 = arith.constant 3 : index
    %c0_22 = arith.constant 0 : index
    %44 = vector.load %arg3[%c3, %c0_22] : memref<8x512xf32, #tpu.memory_space<vmem>>, vector<1x384xf32>
    %cst_23 = arith.constant dense<0.000000e+00> : vector<384xf32>
    %45 = vector.multi_reduction <add>, %42, %cst_23 [0] : vector<8x384xf32> to vector<384xf32>
    %46 = vector.shape_cast %45 : vector<384xf32> to vector<1x384xf32>
    %47 = arith.mulf %42, %42 : vector<8x384xf32>
    %cst_24 = arith.constant dense<0.000000e+00> : vector<384xf32>
    %48 = vector.multi_reduction <add>, %47, %cst_24 [0] : vector<8x384xf32> to vector<384xf32>
    %49 = vector.shape_cast %48 : vector<384xf32> to vector<1x384xf32>
    %cst_25 = arith.constant 1.250000e-01 : f32
    %50 = vector.broadcast %cst_25 : f32 to vector<1x384xf32>
    %51 = arith.mulf %46, %50 : vector<1x384xf32>
    %cst_26 = arith.constant 1.250000e-01 : f32
    %52 = vector.broadcast %cst_26 : f32 to vector<1x384xf32>
    %53 = arith.mulf %49, %52 : vector<1x384xf32>
    %54 = arith.mulf %51, %51 : vector<1x384xf32>
    %55 = arith.subf %53, %54 : vector<1x384xf32>
    %cst_27 = arith.constant 9.99999974E-6 : f32
    %56 = vector.broadcast %cst_27 : f32 to vector<1x384xf32>
    %57 = arith.addf %55, %56 : vector<1x384xf32>
    %58 = math.rsqrt %57 : vector<1x384xf32>
    %59 = arith.mulf %43, %58 : vector<1x384xf32>
    %60 = arith.mulf %51, %59 : vector<1x384xf32>
    %61 = arith.subf %44, %60 : vector<1x384xf32>
    %62 = vector.broadcast %59 : vector<1x384xf32> to vector<8x384xf32>
    %63 = arith.mulf %42, %62 : vector<8x384xf32>
    %64 = vector.broadcast %61 : vector<1x384xf32> to vector<8x384xf32>
    %65 = arith.addf %63, %64 : vector<8x384xf32>
    %cst_28 = arith.constant 0.000000e+00 : f32
    %66 = vector.broadcast %cst_28 : f32 to vector<8x384xf32>
    %67 = arith.maximumf %65, %66 : vector<8x384xf32>
    %c4 = arith.constant 4 : index
    %c0_29 = arith.constant 0 : index
    %68 = vector.load %arg3[%c4, %c0_29] : memref<8x512xf32, #tpu.memory_space<vmem>>, vector<1x384xf32>
    %69 = vector.broadcast %68 : vector<1x384xf32> to vector<8x384xf32>
    %70 = arith.mulf %67, %69 : vector<8x384xf32>
    %cst_30 = arith.constant dense<0.000000e+00> : vector<8xf32>
    %71 = vector.multi_reduction <add>, %70, %cst_30 [1] : vector<8x384xf32> to vector<8xf32>
    %72 = vector.shape_cast %71 : vector<8xf32> to vector<8x1xf32>
    %73 = vector.shape_cast %72 : vector<8x1xf32> to vector<8x1xf32>
    %74 = vector.broadcast %73 : vector<8x1xf32> to vector<8x128xf32>
    %c5 = arith.constant 5 : index
    %c0_31 = arith.constant 0 : index
    %75 = vector.load %arg3[%c5, %c0_31] : memref<8x512xf32, #tpu.memory_space<vmem>>, vector<1x128xf32>
    %76 = vector.broadcast %75 : vector<1x128xf32> to vector<8x128xf32>
    %77 = arith.addf %74, %76 : vector<8x128xf32>
    %c0_32 = arith.constant 0 : index
    %c0_33 = arith.constant 0 : index
    %78 = vector.load %arg5[%c0_32, %c0_33] : memref<8x128xf32, #tpu.memory_space<vmem>>, vector<8x128xf32>
    tpu.vector_store %arg5[%c0_32, %c0_33], %77 {strides = array<i32>} : memref<8x128xf32, #tpu.memory_space<vmem>>, vector<8x128xf32>,
    return
  }
}

</mosaic_0001>

<bundles_post_ra>
// kernel: tpu_custom_call.1
= control target key start
LH: loop header
LB: loop body
LE: loop exit
PB: predicated region body
PF: predicated region fallthrough
CT: control target
= control target key end

     0   :  { %10 = vsyncpa [#allocation5], 0  ;;  %s2457_s0 = inlined_call_operand.vmem [shape: bf16[8,128], index: 0, kind: input, shape index: {}]   ;;  %s2458_s1 = inlined_call_operand.vmem [shape: f32[8,2], index: 1, kind: input, shape index: {}]   ;;  %s2459_s2 = inlined_call_operand.hbm [shape: bf16[128,512], index: 2, kind: input, shape index: {}]   ;;  %s2460_s3 = inlined_call_operand.hbm [shape: f32[8,512], index: 3, kind: input, shape index: {}]   ;;  %s2461_s4 = inlined_call_operand.hbm [shape: bf16[512,384], index: 4, kind: input, shape index: {}]   ;;  %s2462_s5 = inlined_call_operand.hbm [shape: f32[8,128], index: 5, kind: output, shape index: {}]  }
   0x1   :  { %11 = vsyncpa [#allocation8], 0 }
   0x2   :  { %12 = vsyncpa [#allocation6], 0  ;;  %s21_s20 = sshll.u32 %s2459_s2, 4  ;;  %s2268_s21 = smov [#allocation4]   ;;  %s22_s20 = int_to_ptr.hbm [resolvable:$true] %s21_s20 }
   0x3   :  { %s23_s22 = sshll.u32 %s2268_s21, 4  ;;  %s35_s25 = sshll.u32 %s2460_s3, 4  ;;  %s24_s22 = int_to_ptr.vmem [resolvable:$true] %s23_s22  ;;  %s36_s25 = int_to_ptr.hbm [resolvable:$true] %s35_s25 }
   0x4   :  { %s2269_s26 = smov 256   ;;  %s2270_s27 = smov 16  }
   0x5   :  { %29 = dma.hbm_to_vmem [thread:$0]  %s22_s20, 4096, %s24_s22, [#allocation5], %s2269_s26, %s2269_s26, %s2270_s27  }
   0x6   :  { %s2271_s28 = smov [#allocation7]  }
   0x7   :  { %s37_s29 = sshll.u32 %s2271_s28, 4  ;;  %s38_s29 = int_to_ptr.vmem [resolvable:$true] %s37_s29 }
   0x8   :  { %40 = dma.hbm_to_vmem [thread:$0]  %s36_s25, 512, %s38_s29, [#allocation8]  }
   0x9   :  { %2260 = dma.done.wait [#allocation5], 4096  }
   0xa   :  { %2261 = vsyncadd [#allocation5], 4294963200 }
   0xb   :  { %2262 = dma.done.wait [#allocation8], 512  }
   0xc   :  { %2263 = vsyncadd [#allocation8], 4294966784  ;;  %v1613_v0 = vld [vmem:[#allocation4 + $0xe0] sm:$0xf]  ;;  %v2042_v1 = vld [vmem:[#allocation4 + $0xec] sm:$0xf0] }
   0xd   :  { %v2040_v2 = vld [vmem:[#allocation4 + $0xe4] sm:$0xf]  ;;  %v1614_v3 = vor.u32 %v2042_v1, %v1613_v0  ;;  %v1615_v4 = vld [vmem:[#allocation4 + $0xf0] sm:$0xf0]  ;;  %v1621_v5 = vld [vmem:[#allocation4 + $0xe8] sm:$0xf] }
   0xe   :  { %v2043_v6 = vld [vmem:[#allocation4 + $0xf4] sm:$0xf0]  ;;  %v1618_v7 = vor.u32 %v2040_v2, %v1615_v4  ;;  %v2041_v9 = vld [vmem:[#allocation4 + $0xec] sm:$0xf]  ;;  %v1623_v10 = vld [vmem:[#allocation4 + $0xf8] sm:$0xf0] }
   0xf   :  { %v1622_v8 = vor.u32 %v2043_v6, %v1621_v5  ;;  %v1597_v11 = vld [vmem:[#allocation4 + $0xc0] sm:$0xf]  ;;  %255 = vmatpush.bf16.msra.mxu0 %v1614_v3  ;;  %v1626_v12 = vor.u32 %v2041_v9, %v1623_v10  ;;  %v2038_v13 = vld [vmem:[#allocation4 + $0xcc] sm:$0xf0]  ;;  %v2036_v14 = vld [vmem:[#allocation4 + $0xc4] sm:$0xf] }
  0x10   :  { %v1599_v15 = vld [vmem:[#allocation4 + $0xd0] sm:$0xf0]  ;;  %268 = vmatpush.bf16.msra.mxu1 %v1618_v7  ;;  %v1598_v16 = vor.u32 %v2038_v13, %v1597_v11  ;;  %v1605_v18 = vld [vmem:[#allocation4 + $0xc8] sm:$0xf]  ;;  %v2039_v19 = vld [vmem:[#allocation4 + $0xd4] sm:$0xf0] }
  0x11   :  { %281 = vmatpush.bf16.msra.mxu2 %v1622_v8  ;;  %v1602_v17 = vor.u32 %v2036_v14, %v1599_v15  ;;  %v2037_v20 = vld [vmem:[#allocation4 + $0xcc] sm:$0xf]  ;;  %294 = vmatpush.bf16.msra.mxu3 %v1626_v12  ;;  %v1606_v21 = vor.u32 %v2039_v19, %v1605_v18  ;;  %v1607_v22 = vld [vmem:[#allocation4 + $0xd8] sm:$0xf0]  ;;  %v1581_v23 = vld [vmem:[#allocation4 + $0xa0] sm:$0xf] }
  0x12   :  { %v2034_v24 = vld [vmem:[#allocation4 + $0xac] sm:$0xf0]  ;;  %v1610_v25 = vor.u32 %v2037_v20, %v1607_v22  ;;  %v2032_v26 = vld [vmem:[#allocation4 + $0xa4] sm:$0xf]  ;;  %v1583_v27 = vld [vmem:[#allocation4 + $0xb0] sm:$0xf0] }
  0x13   :  { %v1589_v28 = vld [vmem:[#allocation4 + $0xa8] sm:$0xf]  ;;  %256 = vmatpush.bf16.msra.mxu0 %v1598_v16  ;;  %v1582_v29 = vor.u32 %v2034_v24, %v1581_v23  ;;  %v2035_v30 = vld [vmem:[#allocation4 + $0xb4] sm:$0xf0]  ;;  %v2033_v31 = vld [vmem:[#allocation4 + $0xac] sm:$0xf]  ;;  %v1586_v33 = vor.u32 %v2032_v26, %v1583_v27 }
  0x14   :  { %v1591_v32 = vld [vmem:[#allocation4 + $0xb8] sm:$0xf0]  ;;  %269 = vmatpush.bf16.msra.mxu1 %v1602_v17  ;;  %v1590_v34 = vor.u32 %v2035_v30, %v1589_v28  ;;  %v1565_v35 = vld [vmem:[#allocation4 + $0x80] sm:$0xf]  ;;  %v2030_v36 = vld [vmem:[#allocation4 + $0x8c] sm:$0xf0] }
  0x15   :  { %282 = vmatpush.bf16.msra.mxu2 %v1606_v21  ;;  %v2028_v37 = vld [vmem:[#allocation4 + $0x84] sm:$0xf]  ;;  %295 = vmatpush.bf16.msra.mxu3 %v1610_v25  ;;  %v1594_v38 = vor.u32 %v2033_v31, %v1591_v32  ;;  %v1567_v39 = vld [vmem:[#allocation4 + $0x90] sm:$0xf0]  ;;  %v1573_v40 = vld [vmem:[#allocation4 + $0x88] sm:$0xf]  ;;  %v1566_v44 = vor.u32 %v2030_v36, %v1565_v35 }
  0x16   :  { %v2031_v41 = vld [vmem:[#allocation4 + $0x94] sm:$0xf0]  ;;  %v2029_v42 = vld [vmem:[#allocation4 + $0x8c] sm:$0xf]  ;;  %v1575_v43 = vld [vmem:[#allocation4 + $0x98] sm:$0xf0]  ;;  %v1570_v45 = vor.u32 %v2028_v37, %v1567_v39 }
  0x17   :  { %257 = vmatpush.bf16.msra.mxu0 %v1582_v29  ;;  %v1574_v46 = vor.u32 %v2031_v41, %v1573_v40  ;;  %v1549_v47 = vld [vmem:[#allocation4 + $0x60] sm:$0xf]  ;;  %v2026_v48 = vld [vmem:[#allocation4 + $0x6c] sm:$0xf0]  ;;  %v2024_v49 = vld [vmem:[#allocation4 + $0x64] sm:$0xf]  ;;  %v1578_v50 = vor.u32 %v2029_v42, %v1575_v43 }
  0x18   :  { %270 = vmatpush.bf16.msra.mxu1 %v1586_v33  ;;  %v1551_v51 = vld [vmem:[#allocation4 + $0x70] sm:$0xf0]  ;;  %v1557_v52 = vld [vmem:[#allocation4 + $0x68] sm:$0xf]  ;;  %v2027_v53 = vld [vmem:[#allocation4 + $0x74] sm:$0xf0]  ;;  %v1550_v56 = vor.u32 %v2026_v48, %v1549_v47 }
  0x19   :  { %283 = vmatpush.bf16.msra.mxu2 %v1590_v34  ;;  %296 = vmatpush.bf16.msra.mxu3 %v1594_v38  ;;  %v2025_v54 = vld [vmem:[#allocation4 + $0x6c] sm:$0xf]  ;;  %v1559_v55 = vld [vmem:[#allocation4 + $0x78] sm:$0xf0]  ;;  %v1554_v57 = vor.u32 %v2024_v49, %v1551_v51  ;;  %v1558_v58 = vor.u32 %v2027_v53, %v1557_v52  ;;  %v1533_v59 = vld [vmem:[#allocation4 + $0x40] sm:$0xf] }
  0x1a   :  { %v2022_v60 = vld [vmem:[#allocation4 + $0x4c] sm:$0xf0]  ;;  %v2020_v61 = vld [vmem:[#allocation4 + $0x44] sm:$0xf]  ;;  %v1562_v62 = vor.u32 %v2025_v54, %v1559_v55  ;;  %v1535_v63 = vld [vmem:[#allocation4 + $0x50] sm:$0xf0] }
  0x1b   :  { %258 = vmatpush.bf16.msra.mxu0 %v1566_v44  ;;  %v1541_v0 = vld [vmem:[#allocation4 + $0x48] sm:$0xf]  ;;  %v2023_v1 = vld [vmem:[#allocation4 + $0x54] sm:$0xf0]  ;;  %v2021_v2 = vld [vmem:[#allocation4 + $0x4c] sm:$0xf]  ;;  %v1534_v4 = vor.u32 %v2022_v60, %v1533_v59  ;;  %v1538_v5 = vor.u32 %v2020_v61, %v1535_v63 }
  0x1c   :  { %271 = vmatpush.bf16.msra.mxu1 %v1570_v45  ;;  %v1543_v3 = vld [vmem:[#allocation4 + $0x58] sm:$0xf0]  ;;  %v1542_v6 = vor.u32 %v2023_v1, %v1541_v0  ;;  %v1517_v7 = vld [vmem:[#allocation4 + $0x20] sm:$0xf]  ;;  %v2018_v8 = vld [vmem:[#allocation4 + $0x2c] sm:$0xf0] }
  0x1d   :  { %284 = vmatpush.bf16.msra.mxu2 %v1574_v46  ;;  %297 = vmatpush.bf16.msra.mxu3 %v1578_v50  ;;  %v2016_v9 = vld [vmem:[#allocation4 + $0x24] sm:$0xf]  ;;  %v1546_v10 = vor.u32 %v2021_v2, %v1543_v3  ;;  %v1519_v11 = vld [vmem:[#allocation4 + $0x30] sm:$0xf0]  ;;  %v1525_v12 = vld [vmem:[#allocation4 + $0x28] sm:$0xf]  ;;  %v1518_v16 = vor.u32 %v2018_v8, %v1517_v7 }
  0x1e   :  { %v2019_v13 = vld [vmem:[#allocation4 + $0x34] sm:$0xf0]  ;;  %v2017_v14 = vld [vmem:[#allocation4 + $0x2c] sm:$0xf]  ;;  %v1527_v15 = vld [vmem:[#allocation4 + $0x38] sm:$0xf0]  ;;  %v1522_v17 = vor.u32 %v2016_v9, %v1519_v11 }
  0x1f   :  { %259 = vmatpush.bf16.msra.mxu0 %v1550_v56  ;;  %v1526_v18 = vor.u32 %v2019_v13, %v1525_v12  ;;  %v1501_v19 = vld [vmem:[#allocation4] sm:$0xf]  ;;  %v2014_v20 = vld [vmem:[#allocation4 + $0xc] sm:$0xf0]  ;;  %v2012_v21 = vld [vmem:[#allocation4 + $0x4] sm:$0xf]  ;;  %v1530_v22 = vor.u32 %v2017_v14, %v1527_v15 }
  0x20   :  { %272 = vmatpush.bf16.msra.mxu1 %v1554_v57  ;;  %v1503_v23 = vld [vmem:[#allocation4 + $0x10] sm:$0xf0]  ;;  %v1509_v24 = vld [vmem:[#allocation4 + $0x8] sm:$0xf]  ;;  %v2015_v25 = vld [vmem:[#allocation4 + $0x14] sm:$0xf0]  ;;  %v1502_v28 = vor.u32 %v2014_v20, %v1501_v19 }
  0x21   :  { %285 = vmatpush.bf16.msra.mxu2 %v1558_v58  ;;  %298 = vmatpush.bf16.msra.mxu3 %v1562_v62  ;;  %v2013_v26 = vld [vmem:[#allocation4 + $0xc] sm:$0xf]  ;;  %v1511_v27 = vld [vmem:[#allocation4 + $0x18] sm:$0xf0]  ;;  %v1506_v29 = vor.u32 %v2012_v21, %v1503_v23  ;;  %v1510_v30 = vor.u32 %v2015_v25, %v1509_v24  ;;  %v62_v32 = vld [vmem:[%s2457_s0] sm:$0xf] }
  0x22   :  { %v1514_v31 = vor.u32 %v2013_v26, %v1511_v27  ;;  %s56_s7 = sshll.u32 %s2461_s4, 4  ;;  %s2272_s8 = smov [#allocation2]   ;;  %vm429_vm10 = vcmask 1040384   ;;  %vm431_vm12 = vcmask 1042434   ;;  %vm433_vm14 = vcmask 1041408   ;;  %s57_s7 = int_to_ptr.hbm [resolvable:$true] %s56_s7 }
  0x23   :  { %260 = vmatpush.bf16.msra.mxu0 %v1534_v4  ;;  %s58_s9 = sshll.u32 %s2272_s8, 4  ;;  %s59_s9 = int_to_ptr.vmem [resolvable:$true] %s58_s9 }
  0x24   :  { %273 = vmatpush.bf16.msra.mxu1 %v1538_v5  ;;  %61 = dma.hbm_to_vmem [thread:$0]  %s57_s7, 12288, %s59_s9, [#allocation3] }
  0x25   :  { %286 = vmatpush.bf16.msra.mxu2 %v1542_v6  ;;  %299 = vmatpush.bf16.msra.mxu3 %v1546_v10 }
  0x27   :  { %261 = vmatpush.bf16.msra.mxu0 %v1518_v16 }
  0x28   :  { %274 = vmatpush.bf16.msra.mxu1 %v1522_v17 }
  0x29   :  { %287 = vmatpush.bf16.msra.mxu2 %v1526_v18  ;;  %300 = vmatpush.bf16.msra.mxu3 %v1530_v22 }
  0x2b   :  { %262 = vmatpush.bf16.msra.mxu0 %v1502_v28 }
  0x2c   :  { %275 = vmatpush.bf16.msra.mxu1 %v1506_v29 }
  0x2d   :  { %288 = vmatpush.bf16.msra.mxu2 %v1510_v30  ;;  %301 = vmatpush.bf16.msra.mxu3 %v1514_v31 }
  0x2e   :  { %263 = vmatmul.bf16.vlgmr.msra.gmra.mxu0 %v62_v32 }
  0x2f   :  { %276 = vmatmul.bf16.vlgmr.msra.gmra.mxu1 %v62_v32 }
  0x30   :  { %289 = vmatmul.bf16.vlgmr.msra.gmra.mxu2 %v62_v32  ;;  %302 = vmatmul.bf16.vlgmr.msra.gmra.mxu3 %v62_v32 }
  0xab   :  { %v2318_v33 = vpop.f32.mrf.mxu0 }
  0xac   :  { %v310_v34 = vrot.slane %v2318_v33, 4  ;;  %v334_v35 = vmul.f32 %v2318_v33, %v2318_v33  ;;  %v2323_v36 = vpop.f32.mrf.mxu1 }
  0xad   :  { %v316_v37 = vrot.slane %v2323_v36, 4  ;;  %v335_v38 = vmul.f32 %v2323_v36, %v2323_v36 }
  0xae   :  { %v311_v39 = vadd.f32 %v310_v34, %v2318_v33  ;;  %v338_v40 = vrot.slane %v334_v35, 4 }
  0xaf   :  { %v317_v41 = vadd.f32 %v316_v37, %v2323_v36  ;;  %v344_v42 = vrot.slane %v335_v38, 4 }
  0xb0   :  { %v312_v43 = vrot.slane %v311_v39, 2  ;;  %v339_v44 = vadd.f32 %v338_v40, %v334_v35 }
  0xb1   :  { %v318_v45 = vrot.slane %v317_v41, 2  ;;  %v345_v46 = vadd.f32 %v344_v42, %v335_v38 }
  0xb2   :  { %v313_v47 = vadd.f32 %v312_v43, %v311_v39  ;;  %v340_v48 = vrot.slane %v339_v44, 2 }
  0xb3   :  { %v2330_v49 = vpop.f32.mrf.mxu2  ;;  %v319_v50 = vadd.f32 %v318_v45, %v317_v41  ;;  %v346_v51 = vrot.slane %v345_v46, 2  ;;  %v2335_v54 = vpop.f32.mrf.mxu3 }
  0xb4   :  { %v322_v52 = vrot.slane %v2330_v49, 4  ;;  %v336_v53 = vmul.f32 %v2330_v49, %v2330_v49  ;;  %v266_v55 = vpop.f32.mrf.mxu0  ;;  %v314_v56 = vrot.slane %v313_v47, 1  ;;  %v341_v57 = vadd.f32 %v340_v48, %v339_v44  ;;  %v279_v60 = vpop.f32.mrf.mxu1 }
  0xb5   :  { %v328_v58 = vrot.slane %v2335_v54, 4  ;;  %v337_v59 = vmul.f32 %v2335_v54, %v2335_v54  ;;  %v320_v61 = vrot.slane %v319_v50, 1  ;;  %v347_v62 = vadd.f32 %v346_v51, %v345_v46 }
  0xb6   :  { %v323_v63 = vadd.f32 %v322_v52, %v2330_v49  ;;  %v350_v0 = vrot.slane %v336_v53, 4  ;;  %v315_v1 = vadd.f32 %v314_v56, %v313_v47  ;;  %v342_v2 = vrot.slane %v341_v57, 1 }
  0xb7   :  { %v329_v3 = vadd.f32 %v328_v58, %v2335_v54  ;;  %v356_v4 = vrot.slane %v337_v59, 4  ;;  %v321_v5 = vadd.f32 %v320_v61, %v319_v50  ;;  %v348_v6 = vrot.slane %v347_v62, 1 }
  0xb8   :  { %v324_v7 = vrot.slane %v323_v63, 2  ;;  %v351_v8 = vadd.f32 %v350_v0, %v336_v53  ;;  %v343_v9 = vadd.f32 %v342_v2, %v341_v57  ;;  %v2342_v10 = vmul.f32 0.125, %v315_v1 }
  0xb9   :  { %v330_v11 = vrot.slane %v329_v3, 2  ;;  %v357_v12 = vadd.f32 %v356_v4, %v337_v59  ;;  %v349_v13 = vadd.f32 %v348_v6, %v347_v62  ;;  %v2344_v14 = vmul.f32 0.125, %v321_v5 }
  0xba   :  { %v325_v15 = vadd.f32 %v324_v7, %v323_v63  ;;  %v352_v16 = vrot.slane %v351_v8, 2  ;;  %v366_v17 = vmul.f32 0.125, %v343_v9  ;;  %v370_v18 = vmul.f32 %v2342_v10, %v2342_v10 }
  0xbb   :  { %v331_v19 = vadd.f32 %v330_v11, %v329_v3  ;;  %v358_v20 = vrot.slane %v357_v12, 2  ;;  %v292_v21 = vpop.f32.mrf.mxu2  ;;  %v367_v22 = vmul.f32 0.125, %v349_v13  ;;  %v371_v23 = vmul.f32 %v2344_v14, %v2344_v14  ;;  %v305_v26 = vpop.f32.mrf.mxu3 }
  0xbc   :  { %v326_v24 = vrot.slane %v325_v15, 1  ;;  %v353_v25 = vadd.f32 %v352_v16, %v351_v8  ;;  %v374_v27 = vsub.f32 %v366_v17, %v370_v18  ;;  %v307_v21 = vld [vmem:[#allocation7] ss:$8 sm:$0xf] }
  0xbd   :  { %v332_v28 = vrot.slane %v331_v19, 1  ;;  %v359_v29 = vadd.f32 %v358_v20, %v357_v12  ;;  %v375_v30 = vsub.f32 %v367_v22, %v371_v23 }
  0xbe   :  { %v327_v31 = vadd.f32 %v326_v24, %v325_v15  ;;  %v354_v32 = vrot.slane %v353_v25, 1  ;;  %v378_v34 = vadd.f32 1e-05, %v374_v27 }
  0xbf   :  { %v333_v35 = vadd.f32 %v332_v28, %v331_v19  ;;  %v360_v37 = vrot.slane %v359_v29, 1  ;;  %v379_v38 = vadd.f32 1e-05, %v375_v30 }
  0xc0   :  { %v355_v39 = vadd.f32 %v354_v32, %v353_v25  ;;  %v2350_v40 = vmul.f32 0.125, %v327_v31  ;;  %2148 = vrsqrt.f32 %v378_v34  ;;  %vm388_vm11 = vweird.f32 %v378_v34 }
  0xc1   :  { %v361_v41 = vadd.f32 %v360_v37, %v359_v29  ;;  %v2352_v42 = vmul.f32 0.125, %v333_v35  ;;  %2150 = vrsqrt.f32 %v379_v38  ;;  %vm398_vm1 = vweird.f32 %v379_v38 }
  0xc2   :  { %v368_v43 = vmul.f32 0.125, %v355_v39  ;;  %v372_v44 = vmul.f32 %v2350_v40, %v2350_v40 }
  0xc3   :  { %v369_v45 = vmul.f32 0.125, %v361_v41  ;;  %v373_v46 = vmul.f32 %v2352_v42, %v2352_v42  ;;  %v309_v41 = vld [vmem:[#allocation7 + $0x1] ss:$8 sm:$0xf] }
  0xc4   :  { %v376_v47 = vsub.f32 %v368_v43, %v372_v44 }
  0xc5   :  { %v377_v48 = vsub.f32 %v369_v45, %v373_v46 }
  0xc6   :  { %v380_v50 = vadd.f32 1e-05, %v376_v47  ;;  %v2149_v51 = vpop.eup %2148 }
  0xc7   :  { %v381_v52 = vadd.f32 1e-05, %v377_v48  ;;  %v2151_v53 = vpop.eup %2150  ;;  %v383_v55 = vmul.f32 %v2149_v51, %v378_v34  ;;  %vm389_vm6 = vweird.f32 %v2149_v51 }
  0xc8   :  { %2152 = vrsqrt.f32 %v380_v50  ;;  %v393_v56 = vmul.f32 %v2151_v53, %v379_v38  ;;  %vm399_vm0 = vweird.f32 %v2151_v53  ;;  %vm408_vm5 = vweird.f32 %v380_v50  ;;  %vm390_vm13 = vmor %vm388_vm11, %vm389_vm6 }
  0xc9   :  { %2154 = vrsqrt.f32 %v381_v52  ;;  %v384_v58 = vmul.f32 %v2149_v51, %v383_v55  ;;  %vm400_vm2 = vmor %vm398_vm1, %vm399_vm0  ;;  %vm418_vm8 = vweird.f32 %v381_v52 }
  0xca   :  { %v394_v57 = vmul.f32 %v2151_v53, %v393_v56 }
  0xcb   :  { %v385_v0 = vmul.f32 0.5, %v384_v58 }
  0xcc   :  { %v395_v59 = vmul.f32 0.5, %v394_v57 }
  0xcd   :  { %v386_v6 = vsub.f32 1.5, %v385_v0 }
  0xce   :  { %v2153_v60 = vpop.eup %2152  ;;  %v396_v62 = vsub.f32 1.5, %v395_v59 }
  0xcf   :  { %v2155_v61 = vpop.eup %2154  ;;  %v403_v63 = vmul.f32 %v2153_v60, %v380_v50  ;;  %vm409_vm3 = vweird.f32 %v2153_v60  ;;  %v387_v13 = vmul.f32 %v2149_v51, %v386_v6 }
  0xd0   :  { %v413_v1 = vmul.f32 %v2155_v61, %v381_v52  ;;  %v397_v3 = vmul.f32 %v2151_v53, %v396_v62  ;;  %vm419_vm4 = vweird.f32 %v2155_v61  ;;  %vm410_vm7 = vmor %vm408_vm5, %vm409_vm3 }
  0xd1   :  { %v404_v2 = vmul.f32 %v2153_v60, %v403_v63  ;;  %vm420_vm9 = vmor %vm418_vm8, %vm419_vm4  ;;  %v391_v22 = vsel %vm390_vm13, %v2149_v51, %v387_v13 }
  0xd2   :  { %v414_v4 = vmul.f32 %v2155_v61, %v413_v1  ;;  %v401_v9 = vsel %vm400_vm2, %v2151_v53, %v397_v3 }
  0xd3   :  { %v405_v5 = vmul.f32 0.5, %v404_v2  ;;  %v426_v16 = vrot.slane %v401_v9, 7 }
  0xd4   :  { %v415_v7 = vmul.f32 0.5, %v414_v4 }
  0xd5   :  { %v406_v8 = vsub.f32 1.5, %v405_v5  ;;  %v430_v23 = vsel %vm429_vm10, %v391_v22, %v426_v16 }
  0xd6   :  { %v416_v11 = vsub.f32 1.5, %v415_v7 }
  0xd7   :  { %v407_v12 = vmul.f32 %v2153_v60, %v406_v8 }
  0xd8   :  { %v417_v15 = vmul.f32 %v2155_v61, %v416_v11 }
  0xd9   :  { %v411_v17 = vsel %vm410_vm7, %v2153_v60, %v407_v12 }
  0xda   :  { %v427_v18 = vrot.slane %v411_v17, 6  ;;  %v421_v19 = vsel %vm420_vm9, %v2155_v61, %v417_v15 }
  0xdb   :  { %v428_v20 = vrot.slane %v421_v19, 5 }
  0xdd   :  { %v432_v24 = vsel %vm431_vm12, %v427_v18, %v428_v20 }
  0xde   :  { %v434_v25 = vsel %vm433_vm14, %v430_v23, %v432_v24 }
  0xdf   :  { %v436_v26 = vmul.f32 %v434_v25, %v307_v21 }
  0xe1   :  { %v438_v27 = vperm.slane %v436_v26, 0  ;;  %v439_v28 = vperm.slane %v436_v26, 1  ;;  %v440_v29 = vperm.slane %v436_v26, 2  ;;  %v441_v30 = vperm.slane %v436_v26, 3 }
  0xe3   :  { %v447_v31 = vmul.f32 %v439_v28, %v2344_v14  ;;  %v448_v32 = vmul.f32 %v440_v29, %v2350_v40  ;;  %v449_v34 = vmul.f32 %v441_v30, %v2352_v42  ;;  %v446_v35 = vmul.f32 %v438_v27, %v2342_v10 }
  0xe4   :  { %v462_v47 = vmul.f32 %v438_v27, %v2318_v33  ;;  %v463_v14 = vmul.f32 %v439_v28, %v2323_v36  ;;  %v464_v40 = vmul.f32 %v440_v29, %v2330_v49  ;;  %v465_v42 = vmul.f32 %v441_v30, %v2335_v54 }
  0xe5   :  { %v454_v37 = vrot.slane %v447_v31, 7  ;;  %v455_v38 = vrot.slane %v448_v32, 6  ;;  %v456_v39 = vrot.slane %v449_v34, 5 }
  0xe7   :  { %v457_v43 = vsel %vm429_vm10, %v446_v35, %v454_v37  ;;  %v458_v44 = vsel %vm431_vm12, %v455_v38, %v456_v39 }
  0xe8   :  { %v459_v45 = vsel %vm433_vm14, %v457_v43, %v458_v44 }
  0xe9   :  { %v461_v46 = vsub.f32 %v309_v41, %v459_v45 }
  0xeb   :  { %v467_v10 = vperm.slane %v461_v46, 0  ;;  %v468_v48 = vperm.slane %v461_v46, 1  ;;  %v469_v50 = vperm.slane %v461_v46, 2  ;;  %v470_v51 = vperm.slane %v461_v46, 3 }
  0xed   :  { %v2372_v52 = vadd.f32 %v467_v10, %v462_v47  ;;  %v2374_v53 = vadd.f32 %v468_v48, %v463_v14  ;;  %v2376_v55 = vadd.f32 %v469_v50, %v464_v40  ;;  %v2378_v56 = vadd.f32 %v470_v51, %v465_v42 }
  0xef   :  { %v479_v33 = vmax.f32 %v2372_v52, 0.0  ;;  %v480_v36 = vmax.f32 %v2374_v53, 0.0  ;;  %v481_v49 = vmax.f32 %v2376_v55, 0.0  ;;  %v482_v54 = vmax.f32 %v2378_v56, 0.0 }
  0xf0   :  { %2264 = dma.done.wait [#allocation3], 12288 }
  0xf1   :  { %2265 = vsyncadd [#allocation3], 4294955008  ;;  %v1713_v57 = vld [vmem:[#allocation2 + $0xa8] sm:$0xf]  ;;  %v2066_v58 = vld [vmem:[#allocation2 + $0xb0] sm:$0xf0] }
  0xf2   :  { %v1809_v59 = vld [vmem:[#allocation2 + $0x168] sm:$0xf]  ;;  %v1714_v60 = vor.u32 %v2066_v58, %v1713_v57  ;;  %v2090_v61 = vld [vmem:[#allocation2 + $0x170] sm:$0xf0]  ;;  %v1701_v4 = vld [vmem:[#allocation2 + $0x90] sm:$0xf] }
  0xf3   :  { %v1905_v62 = vld [vmem:[#allocation2 + $0x228] sm:$0xf]  ;;  %v2114_v63 = vld [vmem:[#allocation2 + $0x230] sm:$0xf0]  ;;  %v1810_v0 = vor.u32 %v2090_v61, %v1809_v59  ;;  %v2063_v6 = vld [vmem:[#allocation2 + $0x98] sm:$0xf0] }
  0xf4   :  { %v1906_v1 = vor.u32 %v2114_v63, %v1905_v62  ;;  %v2001_v2 = vld [vmem:[#allocation2 + $0x2e8] sm:$0xf]  ;;  %v2138_v3 = vld [vmem:[#allocation2 + $0x2f0] sm:$0xf0]  ;;  %1149 = vmatpush.bf16.msrb.mxu0 %v1714_v60  ;;  %v1797_v7 = vld [vmem:[#allocation2 + $0x150] sm:$0xf]  ;;  %v1702_v9 = vor.u32 %v2063_v6, %v1701_v4 }
  0xf5   :  { %v2002_v5 = vor.u32 %v2138_v3, %v2001_v2  ;;  %v2087_v8 = vld [vmem:[#allocation2 + $0x158] sm:$0xf0]  ;;  %1162 = vmatpush.bf16.msrb.mxu1 %v1810_v0  ;;  %v1893_v12 = vld [vmem:[#allocation2 + $0x210] sm:$0xf]  ;;  %v1689_v18 = vld [vmem:[#allocation2 + $0x78] sm:$0xf] }
  0xf6   :  { %1175 = vmatpush.bf16.msrb.mxu2 %v1906_v1  ;;  %v1798_v11 = vor.u32 %v2087_v8, %v1797_v7  ;;  %v2111_v13 = vld [vmem:[#allocation2 + $0x218] sm:$0xf0]  ;;  %v1989_v15 = vld [vmem:[#allocation2 + $0x2d0] sm:$0xf]  ;;  %v2060_v19 = vld [vmem:[#allocation2 + $0x80] sm:$0xf0] }
  0xf7   :  { %1188 = vmatpush.bf16.msrb.mxu3 %v2002_v5  ;;  %v1894_v16 = vor.u32 %v2111_v13, %v1893_v12  ;;  %v2135_v17 = vld [vmem:[#allocation2 + $0x2d8] sm:$0xf0]  ;;  %v1785_v21 = vld [vmem:[#allocation2 + $0x138] sm:$0xf]  ;;  %v2084_v22 = vld [vmem:[#allocation2 + $0x140] sm:$0xf0]  ;;  %v1690_v24 = vor.u32 %v2060_v19, %v1689_v18 }
  0xf8   :  { %v1990_v20 = vor.u32 %v2135_v17, %v1989_v15  ;;  %v1881_v23 = vld [vmem:[#allocation2 + $0x1f8] sm:$0xf]  ;;  %1150 = vmatpush.bf16.msrb.mxu0 %v1702_v9  ;;  %v2108_v25 = vld [vmem:[#allocation2 + $0x200] sm:$0xf0]  ;;  %v1786_v28 = vor.u32 %v2084_v22, %v1785_v21  ;;  %v1677_v30 = vld [vmem:[#allocation2 + $0x60] sm:$0xf] }
  0xf9   :  { %v1977_v26 = vld [vmem:[#allocation2 + $0x2b8] sm:$0xf]  ;;  %v2132_v27 = vld [vmem:[#allocation2 + $0x2c0] sm:$0xf0]  ;;  %1163 = vmatpush.bf16.msrb.mxu1 %v1798_v11  ;;  %v1882_v29 = vor.u32 %v2108_v25, %v1881_v23  ;;  %v2057_v31 = vld [vmem:[#allocation2 + $0x68] sm:$0xf0] }
  0xfa   :  { %1176 = vmatpush.bf16.msrb.mxu2 %v1894_v16  ;;  %v1773_v32 = vld [vmem:[#allocation2 + $0x120] sm:$0xf]  ;;  %v1978_v34 = vor.u32 %v2132_v27, %v1977_v26  ;;  %v2081_v35 = vld [vmem:[#allocation2 + $0x128] sm:$0xf0]  ;;  %v1678_v43 = vor.u32 %v2057_v31, %v1677_v30  ;;  %v1665_v46 = vld [vmem:[#allocation2 + $0x48] sm:$0xf] }
  0xfb   :  { %1189 = vmatpush.bf16.msrb.mxu3 %v1990_v20  ;;  %v1869_v37 = vld [vmem:[#allocation2 + $0x1e0] sm:$0xf]  ;;  %v2105_v38 = vld [vmem:[#allocation2 + $0x1e8] sm:$0xf0]  ;;  %v1774_v44 = vor.u32 %v2081_v35, %v1773_v32  ;;  %v2054_v47 = vld [vmem:[#allocation2 + $0x50] sm:$0xf0] }
  0xfc   :  { %v1965_v39 = vld [vmem:[#allocation2 + $0x2a0] sm:$0xf]  ;;  %v2129_v41 = vld [vmem:[#allocation2 + $0x2a8] sm:$0xf0]  ;;  %1151 = vmatpush.bf16.msrb.mxu0 %v1690_v24  ;;  %v1870_v45 = vor.u32 %v2105_v38, %v1869_v37  ;;  %v1761_v14 = vld [vmem:[#allocation2 + $0x108] sm:$0xf]  ;;  %v1666_v57 = vor.u32 %v2054_v47, %v1665_v46 }
  0xfd   :  { %1164 = vmatpush.bf16.msrb.mxu1 %v1786_v28  ;;  %v1966_v40 = vor.u32 %v2129_v41, %v1965_v39  ;;  %v2078_v42 = vld [vmem:[#allocation2 + $0x110] sm:$0xf0]  ;;  %v1857_v10 = vld [vmem:[#allocation2 + $0x1c8] sm:$0xf]  ;;  %v1653_v60 = vld [vmem:[#allocation2 + $0x30] sm:$0xf] }
  0xfe   :  { %1177 = vmatpush.bf16.msrb.mxu2 %v1882_v29  ;;  %v2102_v48 = vld [vmem:[#allocation2 + $0x1d0] sm:$0xf0]  ;;  %v1953_v50 = vld [vmem:[#allocation2 + $0x288] sm:$0xf]  ;;  %v1762_v58 = vor.u32 %v2078_v42, %v1761_v14  ;;  %v2051_v61 = vld [vmem:[#allocation2 + $0x38] sm:$0xf0] }
  0xff   :  { %1190 = vmatpush.bf16.msrb.mxu3 %v1978_v34  ;;  %v2126_v51 = vld [vmem:[#allocation2 + $0x290] sm:$0xf0]  ;;  %v1858_v59 = vor.u32 %v2102_v48, %v1857_v10  ;;  %v1749_v62 = vld [vmem:[#allocation2 + $0xf0] sm:$0xf]  ;;  %v2075_v0 = vld [vmem:[#allocation2 + $0xf8] sm:$0xf0]  ;;  %v1654_v5 = vor.u32 %v2051_v61, %v1653_v60 }
 0x100   :  { %1152 = vmatpush.bf16.msrb.mxu0 %v1678_v43  ;;  %v1954_v63 = vor.u32 %v2126_v51, %v1953_v50  ;;  %v1845_v1 = vld [vmem:[#allocation2 + $0x1b0] sm:$0xf]  ;;  %v2099_v2 = vld [vmem:[#allocation2 + $0x1b8] sm:$0xf0]  ;;  %v1750_v6 = vor.u32 %v2075_v0, %v1749_v62  ;;  %v1641_v8 = vld [vmem:[#allocation2 + $0x18] sm:$0xf]  ;;  %v2392_v62 = vpack.c.bf16 %v479_v33, %v479_v33 }
 0x101   :  { %1165 = vmatpush.bf16.msrb.mxu1 %v1774_v44  ;;  %v1941_v3 = vld [vmem:[#allocation2 + $0x270] sm:$0xf]  ;;  %v2123_v4 = vld [vmem:[#allocation2 + $0x278] sm:$0xf0]  ;;  %v1846_v7 = vor.u32 %v2099_v2, %v1845_v1  ;;  %v2048_v9 = vld [vmem:[#allocation2 + $0x20] sm:$0xf0] }
 0x102   :  { %1178 = vmatpush.bf16.msrb.mxu2 %v1870_v45  ;;  %v1737_v11 = vld [vmem:[#allocation2 + $0xd8] sm:$0xf]  ;;  %v1942_v12 = vor.u32 %v2123_v4, %v1941_v3  ;;  %v2072_v13 = vld [vmem:[#allocation2 + $0xe0] sm:$0xf0]  ;;  %v1642_v19 = vor.u32 %v2048_v9, %v1641_v8  ;;  %v1629_v20 = vld [vmem:[#allocation2] sm:$0xf] }
 0x103   :  { %1191 = vmatpush.bf16.msrb.mxu3 %v1966_v40  ;;  %v1833_v15 = vld [vmem:[#allocation2 + $0x198] sm:$0xf]  ;;  %v2096_v16 = vld [vmem:[#allocation2 + $0x1a0] sm:$0xf0]  ;;  %v2045_v21 = vld [vmem:[#allocation2 + $0x8] sm:$0xf0]  ;;  %v1738_v22 = vor.u32 %v2072_v13, %v1737_v11 }
 0x104   :  { %1153 = vmatpush.bf16.msrb.mxu0 %v1666_v57  ;;  %v1929_v17 = vld [vmem:[#allocation2 + $0x258] sm:$0xf]  ;;  %v2120_v18 = vld [vmem:[#allocation2 + $0x260] sm:$0xf0]  ;;  %v1834_v23 = vor.u32 %v2096_v16, %v1833_v15  ;;  %v1725_v24 = vld [vmem:[#allocation2 + $0xc0] sm:$0xf]  ;;  %v1630_v35 = vor.u32 %v2045_v21, %v1629_v20 }
 0x105   :  { %1166 = vmatpush.bf16.msrb.mxu1 %v1762_v58  ;;  %v2069_v25 = vld [vmem:[#allocation2 + $0xc8] sm:$0xf0]  ;;  %v1821_v26 = vld [vmem:[#allocation2 + $0x180] sm:$0xf]  ;;  %v1930_v27 = vor.u32 %v2120_v18, %v1929_v17  ;;  %v1715_v32 = vld [vmem:[#allocation2 + $0xb4] sm:$0xf0] }
 0x106   :  { %1179 = vmatpush.bf16.msrb.mxu2 %v1858_v59  ;;  %v2093_v28 = vld [vmem:[#allocation2 + $0x188] sm:$0xf0]  ;;  %v1917_v29 = vld [vmem:[#allocation2 + $0x240] sm:$0xf]  ;;  %v1811_v37 = vld [vmem:[#allocation2 + $0x174] sm:$0xf0]  ;;  %v1726_v41 = vor.u32 %v2069_v25, %v1725_v24  ;;  %v2387_v59 = vpack.c.bf16 %v481_v49, %v481_v49  ;;  %v2402_v49 = vpack.c.bf16 %v480_v36, %v480_v36 }
 0x107   :  { %1192 = vmatpush.bf16.msrb.mxu3 %v1954_v63  ;;  %v2117_v30 = vld [vmem:[#allocation2 + $0x248] sm:$0xf0]  ;;  %v1907_v39 = vld [vmem:[#allocation2 + $0x234] sm:$0xf0]  ;;  %v1822_v43 = vor.u32 %v2093_v28, %v1821_v26  ;;  %v2062_v42 = vld [vmem:[#allocation2 + $0x94] sm:$0xf]  ;;  %v2397_v63 = vpack.c.bf16 %v482_v54, %v482_v54 }
 0x108   :  { %1154 = vmatpush.bf16.msrb.mxu0 %v1654_v5  ;;  %v2065_v31 = vld [vmem:[#allocation2 + $0xac] sm:$0xf]  ;;  %v2003_v45 = vld [vmem:[#allocation2 + $0x2f4] sm:$0xf0]  ;;  %v1918_v46 = vor.u32 %v2117_v30, %v1917_v29  ;;  %v1703_v10 = vld [vmem:[#allocation2 + $0x9c] sm:$0xf0] }
 0x109   :  { %1167 = vmatpush.bf16.msrb.mxu1 %v1750_v6  ;;  %v2089_v34 = vld [vmem:[#allocation2 + $0x16c] sm:$0xf]  ;;  %v1718_v47 = vor.u32 %v2065_v31, %v1715_v32  ;;  %v2086_v48 = vld [vmem:[#allocation2 + $0x154] sm:$0xf]  ;;  %v1799_v51 = vld [vmem:[#allocation2 + $0x15c] sm:$0xf0]  ;;  %v1706_v55 = vor.u32 %v2062_v42, %v1703_v10 }
 0x10a   :  { %1180 = vmatpush.bf16.msrb.mxu2 %v1846_v7  ;;  %v2113_v38 = vld [vmem:[#allocation2 + $0x22c] sm:$0xf]  ;;  %v1814_v14 = vor.u32 %v2089_v34, %v1811_v37  ;;  %v2110_v57 = vld [vmem:[#allocation2 + $0x214] sm:$0xf]  ;;  %v1895_v58 = vld [vmem:[#allocation2 + $0x21c] sm:$0xf0]  ;;  %v1802_v0 = vor.u32 %v2086_v48, %v1799_v51 }
 0x10b   :  { %1193 = vmatpush.bf16.msrb.mxu3 %v1942_v12  ;;  %v2137_v44 = vld [vmem:[#allocation2 + $0x2ec] sm:$0xf]  ;;  %v1910_v40 = vor.u32 %v2113_v38, %v1907_v39  ;;  %v2134_v60 = vld [vmem:[#allocation2 + $0x2d4] sm:$0xf]  ;;  %v1991_v61 = vld [vmem:[#allocation2 + $0x2dc] sm:$0xf0]  ;;  %v1898_v52 = vor.u32 %v2110_v57, %v1895_v58 }
 0x10c   :  { %1155 = vmatpush.bf16.msrb.mxu0 %v1642_v19  ;;  %v2006_v50 = vor.u32 %v2137_v44, %v2003_v45  ;;  %v2059_v1 = vld [vmem:[#allocation2 + $0x7c] sm:$0xf]  ;;  %v1691_v33 = vld [vmem:[#allocation2 + $0x84] sm:$0xf0]  ;;  %v1994_v56 = vor.u32 %v2134_v60, %v1991_v61  ;;  %v619_v36 = vld [vmem:[%s2458_s1] sm:$0xff]  ;;  %v2273_v18 = vmov 0  }
 0x10d   :  { %1168 = vmatpush.bf16.msrb.mxu1 %v1738_v22  ;;  %v2083_v2 = vld [vmem:[#allocation2 + $0x13c] sm:$0xf]  ;;  %v1787_v54 = vld [vmem:[#allocation2 + $0x144] sm:$0xf0]  ;;  %v1694_v53 = vor.u32 %v2059_v1, %v1691_v33  ;;  %v2056_v9 = vld [vmem:[#allocation2 + $0x64] sm:$0xf]  ;;  %2156 = vset.pattern.permute.xlu0 %v2273_v18 }
 0x10e   :  { %1181 = vmatpush.bf16.msrb.mxu2 %v1834_v23  ;;  %v2107_v3 = vld [vmem:[#allocation2 + $0x1fc] sm:$0xf]  ;;  %v1883_v4 = vld [vmem:[#allocation2 + $0x204] sm:$0xf0]  ;;  %v1790_v7 = vor.u32 %v2083_v2, %v1787_v54  ;;  %v1679_v11 = vld [vmem:[#allocation2 + $0x6c] sm:$0xf0]  ;;  %624 = vperm.xlu0 %2156, %v619_v36  }
 0x10f   :  { %1194 = vmatpush.bf16.msrb.mxu3 %v1930_v27  ;;  %v2131_v5 = vld [vmem:[#allocation2 + $0x2bc] sm:$0xf]  ;;  %v1979_v6 = vld [vmem:[#allocation2 + $0x2c4] sm:$0xf0]  ;;  %v1886_v8 = vor.u32 %v2107_v3, %v1883_v4  ;;  %v2080_v12 = vld [vmem:[#allocation2 + $0x124] sm:$0xf]  ;;  %v1682_v21 = vor.u32 %v2056_v9, %v1679_v11 }
 0x110   :  { %1156 = vmatpush.bf16.msrb.mxu0 %v1630_v35  ;;  %v1982_v13 = vor.u32 %v2131_v5, %v1979_v6  ;;  %v1775_v15 = vld [vmem:[#allocation2 + $0x12c] sm:$0xf0]  ;;  %v2104_v16 = vld [vmem:[#allocation2 + $0x1e4] sm:$0xf]  ;;  %v2053_v24 = vld [vmem:[#allocation2 + $0x4c] sm:$0xf] }
 0x111   :  { %1169 = vmatpush.bf16.msrb.mxu1 %v1726_v41  ;;  %v1871_v17 = vld [vmem:[#allocation2 + $0x1ec] sm:$0xf0]  ;;  %v2128_v19 = vld [vmem:[#allocation2 + $0x2a4] sm:$0xf]  ;;  %v1778_v22 = vor.u32 %v2080_v12, %v1775_v15  ;;  %v1667_v25 = vld [vmem:[#allocation2 + $0x54] sm:$0xf0] }
 0x112   :  { %1182 = vmatpush.bf16.msrb.mxu2 %v1822_v43  ;;  %v1967_v20 = vld [vmem:[#allocation2 + $0x2ac] sm:$0xf0]  ;;  %v1874_v23 = vor.u32 %v2104_v16, %v1871_v17  ;;  %v2077_v26 = vld [vmem:[#allocation2 + $0x10c] sm:$0xf]  ;;  %v1763_v28 = vld [vmem:[#allocation2 + $0x114] sm:$0xf0]  ;;  %v1670_v34 = vor.u32 %v2053_v24, %v1667_v25 }
 0x113   :  { %1195 = vmatpush.bf16.msrb.mxu3 %v1918_v46  ;;  %1157 = vmatmul.bf16.vlgmr.msrb.gmra.mxu0 %v2392_v62  ;;  %v1970_v27 = vor.u32 %v2128_v19, %v1967_v20  ;;  %v2101_v29 = vld [vmem:[#allocation2 + $0x1cc] sm:$0xf]  ;;  %v1859_v30 = vld [vmem:[#allocation2 + $0x1d4] sm:$0xf0]  ;;  %v1766_v35 = vor.u32 %v2077_v26, %v1763_v28  ;;  %v2050_v38 = vld [vmem:[#allocation2 + $0x34] sm:$0xf] }
 0x114   :  { %1201 = vmatpush.bf16.msra.mxu0 %v1718_v47  ;;  %1170 = vmatmul.bf16.vlgmr.msrb.gmra.mxu1 %v2402_v49  ;;  %v2125_v31 = vld [vmem:[#allocation2 + $0x28c] sm:$0xf]  ;;  %v1955_v32 = vld [vmem:[#allocation2 + $0x294] sm:$0xf0]  ;;  %v1862_v37 = vor.u32 %v2101_v29, %v1859_v30  ;;  %v1655_v39 = vld [vmem:[#allocation2 + $0x3c] sm:$0xf0] }
 0x115   :  { %1214 = vmatpush.bf16.msra.mxu1 %v1814_v14  ;;  %1183 = vmatmul.bf16.vlgmr.msrb.gmra.mxu2 %v2387_v59  ;;  %v2074_v41 = vld [vmem:[#allocation2 + $0xf4] sm:$0xf]  ;;  %v1958_v43 = vor.u32 %v2125_v31, %v1955_v32  ;;  %v1751_v44 = vld [vmem:[#allocation2 + $0xfc] sm:$0xf0]  ;;  %v1658_v42 = vor.u32 %v2050_v38, %v1655_v39  ;;  %v1643_v51 = vld [vmem:[#allocation2 + $0x24] sm:$0xf0] }
 0x116   :  { %1227 = vmatpush.bf16.msra.mxu2 %v1910_v40  ;;  %1196 = vmatmul.bf16.vlgmr.msrb.gmra.mxu3 %v2397_v63  ;;  %v2098_v45 = vld [vmem:[#allocation2 + $0x1b4] sm:$0xf]  ;;  %v1847_v46 = vld [vmem:[#allocation2 + $0x1bc] sm:$0xf0]  ;;  %v2274_v40 = vmov 1   ;;  %v1754_v10 = vor.u32 %v2074_v41, %v1751_v44  ;;  %s2275_s1 = smov [#allocation9]  }
 0x117   :  { %1240 = vmatpush.bf16.msra.mxu3 %v2006_v50  ;;  %v2122_v47 = vld [vmem:[#allocation2 + $0x274] sm:$0xf]  ;;  %v1943_v14 = vld [vmem:[#allocation2 + $0x27c] sm:$0xf0]  ;;  %2157 = vset.pattern.permute.xlu0 %v2274_v40  ;;  %v1850_v48 = vor.u32 %v2098_v45, %v1847_v46  ;;  %v2047_v50 = vld [vmem:[#allocation2 + $0x1c] sm:$0xf] }
 0x118   :  { %1202 = vmatpush.bf16.msra.mxu0 %v1706_v55  ;;  %1308 = vperm.xlu0 %2157, %v619_v36   ;;  %v2071_v57 = vld [vmem:[#allocation2 + $0xdc] sm:$0xf]  ;;  %v1946_v58 = vor.u32 %v2122_v47, %v1943_v14  ;;  %v1739_v60 = vld [vmem:[#allocation2 + $0xe4] sm:$0xf0]  ;;  %v1646_v1 = vor.u32 %v2047_v50, %v1643_v51  ;;  %v2044_v33 = vld [vmem:[#allocation2 + $0x4] sm:$0xf] }
 0x119   :  { %1215 = vmatpush.bf16.msra.mxu1 %v1802_v0  ;;  %v2095_v61 = vld [vmem:[#allocation2 + $0x19c] sm:$0xf]  ;;  %v1835_v55 = vld [vmem:[#allocation2 + $0x1a4] sm:$0xf0]  ;;  %v1631_v2 = vld [vmem:[#allocation2 + $0xc] sm:$0xf0] }
 0x11a   :  { %1228 = vmatpush.bf16.msra.mxu2 %v1898_v52  ;;  %v2119_v0 = vld [vmem:[#allocation2 + $0x25c] sm:$0xf]  ;;  %v1931_v52 = vld [vmem:[#allocation2 + $0x264] sm:$0xf0]  ;;  %v1838_v54 = vor.u32 %v2095_v61, %v1835_v55  ;;  %v2068_v3 = vld [vmem:[#allocation2 + $0xc4] sm:$0xf]  ;;  %v1634_v12 = vor.u32 %v2044_v33, %v1631_v2 }
 0x11b   :  { %1241 = vmatpush.bf16.msra.mxu3 %v1994_v56  ;;  %v1742_v56 = vor.u32 %v2071_v57, %v1739_v60  ;;  %v1727_v4 = vld [vmem:[#allocation2 + $0xcc] sm:$0xf0]  ;;  %v2092_v5 = vld [vmem:[#allocation2 + $0x184] sm:$0xf]  ;;  %v1934_v6 = vor.u32 %v2119_v0, %v1931_v52  ;;  %v2067_v9 = vld [vmem:[#allocation2 + $0xb8] sm:$0xf0] }
 0x11c   :  { %1203 = vmatpush.bf16.msra.mxu0 %v1694_v53  ;;  %v1823_v53 = vld [vmem:[#allocation2 + $0x18c] sm:$0xf0]  ;;  %v2116_v36 = vld [vmem:[#allocation2 + $0x244] sm:$0xf]  ;;  %v2115_v16 = vld [vmem:[#allocation2 + $0x238] sm:$0xf0]  ;;  %v1730_v17 = vor.u32 %v2068_v3, %v1727_v4 }
 0x11d   :  { %1216 = vmatpush.bf16.msra.mxu1 %v1790_v7  ;;  %v1919_v7 = vld [vmem:[#allocation2 + $0x24c] sm:$0xf0]  ;;  %v1826_v18 = vor.u32 %v2092_v5, %v1823_v53  ;;  %v2139_v20 = vld [vmem:[#allocation2 + $0x2f8] sm:$0xf0]  ;;  %v1709_v25 = vld [vmem:[#allocation2 + $0x98] sm:$0xf] }
 0x11e   :  { %1229 = vmatpush.bf16.msra.mxu2 %v1886_v8  ;;  %v1721_v8 = vld [vmem:[#allocation2 + $0xb0] sm:$0xf]  ;;  %v2064_v26 = vld [vmem:[#allocation2 + $0xa0] sm:$0xf0]  ;;  %v1901_v30 = vld [vmem:[#allocation2 + $0x218] sm:$0xf] }
 0x11f   :  { %1242 = vmatpush.bf16.msra.mxu3 %v1982_v13  ;;  %v1817_v11 = vld [vmem:[#allocation2 + $0x170] sm:$0xf]  ;;  %v2091_v13 = vld [vmem:[#allocation2 + $0x178] sm:$0xf0]  ;;  %v2088_v29 = vld [vmem:[#allocation2 + $0x160] sm:$0xf0] }
 0x120   :  { %1204 = vmatpush.bf16.msra.mxu0 %v1682_v21  ;;  %v1913_v15 = vld [vmem:[#allocation2 + $0x230] sm:$0xf]  ;;  %v1922_v21 = vor.u32 %v2116_v36, %v1919_v7  ;;  %v2112_v31 = vld [vmem:[#allocation2 + $0x220] sm:$0xf0]  ;;  %v1997_v32 = vld [vmem:[#allocation2 + $0x2d8] sm:$0xf] }
 0x121   :  { %1217 = vmatpush.bf16.msra.mxu1 %v1778_v22  ;;  %v2009_v19 = vld [vmem:[#allocation2 + $0x2f0] sm:$0xf]  ;;  %v1722_v22 = vor.u32 %v2067_v9, %v1721_v8  ;;  %v1914_v24 = vor.u32 %v2115_v16, %v1913_v15  ;;  %v1902_v38 = vor.u32 %v2112_v31, %v1901_v30  ;;  %v1697_v39 = vld [vmem:[#allocation2 + $0x80] sm:$0xf]  ;;  %v2061_v41 = vld [vmem:[#allocation2 + $0x88] sm:$0xf0] }
 0x122   :  { %1230 = vmatpush.bf16.msra.mxu2 %v1874_v23  ;;  %v1818_v23 = vor.u32 %v2091_v13, %v1817_v11  ;;  %v2010_v28 = vor.u32 %v2139_v20, %v2009_v19  ;;  %v2085_v45 = vld [vmem:[#allocation2 + $0x148] sm:$0xf0]  ;;  %v1889_v46 = vld [vmem:[#allocation2 + $0x200] sm:$0xf]  ;;  %v1685_v50 = vld [vmem:[#allocation2 + $0x68] sm:$0xf] }
 0x123   :  { %1243 = vmatpush.bf16.msra.mxu3 %v1970_v27  ;;  %v1805_v27 = vld [vmem:[#allocation2 + $0x158] sm:$0xf]  ;;  %v2109_v47 = vld [vmem:[#allocation2 + $0x208] sm:$0xf0]  ;;  %v1985_v14 = vld [vmem:[#allocation2 + $0x2c0] sm:$0xf] }
 0x124   :  { %1205 = vmatpush.bf16.msra.mxu0 %v1670_v34  ;;  %v2136_v34 = vld [vmem:[#allocation2 + $0x2e0] sm:$0xf0]  ;;  %v2133_v40 = vld [vmem:[#allocation2 + $0x2c8] sm:$0xf0]  ;;  %v2058_v51 = vld [vmem:[#allocation2 + $0x70] sm:$0xf0] }
 0x125   :  { %1218 = vmatpush.bf16.msra.mxu1 %v1766_v35  ;;  %v1710_v35 = vor.u32 %v2064_v26, %v1709_v25  ;;  %v1998_v44 = vor.u32 %v2136_v34, %v1997_v32  ;;  %v1781_v57 = vld [vmem:[#allocation2 + $0x128] sm:$0xf]  ;;  %v2082_v60 = vld [vmem:[#allocation2 + $0x130] sm:$0xf0]  ;;  %v1769_v3 = vld [vmem:[#allocation2 + $0x110] sm:$0xf] }
 0x126   :  { %1231 = vmatpush.bf16.msra.mxu2 %v1862_v37  ;;  %v1806_v37 = vor.u32 %v2088_v29, %v1805_v27  ;;  %v1877_v61 = vld [vmem:[#allocation2 + $0x1e8] sm:$0xf]  ;;  %v2106_v55 = vld [vmem:[#allocation2 + $0x1f0] sm:$0xf0]  ;;  %v1782_v33 = vor.u32 %v2082_v60, %v1781_v57  ;;  %v2079_v5 = vld [vmem:[#allocation2 + $0x118] sm:$0xf0] }
 0x127   :  { %1244 = vmatpush.bf16.msra.mxu3 %v1958_v43  ;;  %v1793_v43 = vld [vmem:[#allocation2 + $0x140] sm:$0xf]  ;;  %v1973_v0 = vld [vmem:[#allocation2 + $0x2a8] sm:$0xf]  ;;  %v2130_v52 = vld [vmem:[#allocation2 + $0x2b0] sm:$0xf0]  ;;  %v1878_v2 = vor.u32 %v2106_v55, %v1877_v61  ;;  %v1770_v9 = vor.u32 %v2079_v5, %v1769_v3 }
 0x128   :  { %1206 = vmatpush.bf16.msra.mxu0 %v1658_v42  ;;  %v1698_v42 = vor.u32 %v2061_v41, %v1697_v39  ;;  %v1974_v4 = vor.u32 %v2130_v52, %v1973_v0  ;;  %v2103_v53 = vld [vmem:[#allocation2 + $0x1d8] sm:$0xf0]  ;;  %v1961_v36 = vld [vmem:[#allocation2 + $0x290] sm:$0xf]  ;;  %v2052_v13 = vld [vmem:[#allocation2 + $0x40] sm:$0xf0] }
 0x129   :  { %1219 = vmatpush.bf16.msra.mxu1 %v1754_v10  ;;  %v1794_v10 = vor.u32 %v2085_v45, %v1793_v43  ;;  %v2127_v7 = vld [vmem:[#allocation2 + $0x298] sm:$0xf0]  ;;  %v1757_v15 = vld [vmem:[#allocation2 + $0xf8] sm:$0xf]  ;;  %v2100_v19 = vld [vmem:[#allocation2 + $0x1c0] sm:$0xf0] }
 0x12a   :  { %1232 = vmatpush.bf16.msra.mxu2 %v1850_v48  ;;  %v1890_v48 = vor.u32 %v2109_v47, %v1889_v46  ;;  %v1962_v16 = vor.u32 %v2127_v7, %v1961_v36  ;;  %v1949_v20 = vld [vmem:[#allocation2 + $0x278] sm:$0xf]  ;;  %v1649_v25 = vld [vmem:[#allocation2 + $0x20] sm:$0xf]  ;;  %v2049_v26 = vld [vmem:[#allocation2 + $0x28] sm:$0xf0] }
 0x12b   :  { %1245 = vmatpush.bf16.msra.mxu3 %v1946_v58  ;;  %v1986_v58 = vor.u32 %v2133_v40, %v1985_v14  ;;  %v1745_v27 = vld [vmem:[#allocation2 + $0xe0] sm:$0xf]  ;;  %v2073_v29 = vld [vmem:[#allocation2 + $0xe8] sm:$0xf0]  ;;  %v1637_v39 = vld [vmem:[#allocation2 + $0x8] sm:$0xf] }
 0x12c   :  { %1207 = vmatpush.bf16.msra.mxu0 %v1646_v1  ;;  %v1686_v1 = vor.u32 %v2058_v51, %v1685_v50  ;;  %v1841_v30 = vld [vmem:[#allocation2 + $0x1a0] sm:$0xf]  ;;  %v2097_v31 = vld [vmem:[#allocation2 + $0x1a8] sm:$0xf0]  ;;  %v2046_v41 = vld [vmem:[#allocation2 + $0x10] sm:$0xf0] }
 0x12d   :  { %1220 = vmatpush.bf16.msra.mxu1 %v1742_v56  ;;  %v1673_v56 = vld [vmem:[#allocation2 + $0x50] sm:$0xf]  ;;  %v1937_v32 = vld [vmem:[#allocation2 + $0x260] sm:$0xf]  ;;  %v2121_v34 = vld [vmem:[#allocation2 + $0x268] sm:$0xf0] }
 0x12e   :  { %1233 = vmatpush.bf16.msra.mxu2 %v1838_v54  ;;  %v2055_v54 = vld [vmem:[#allocation2 + $0x58] sm:$0xf0]  ;;  %v1733_v43 = vld [vmem:[#allocation2 + $0xc8] sm:$0xf]  ;;  %v2070_v45 = vld [vmem:[#allocation2 + $0xd0] sm:$0xf0] }
 0x12f   :  { %1246 = vmatpush.bf16.msra.mxu3 %v1934_v6  ;;  %v1865_v6 = vld [vmem:[#allocation2 + $0x1d0] sm:$0xf]  ;;  %v1674_v8 = vor.u32 %v2055_v54, %v1673_v56  ;;  %v1829_v46 = vld [vmem:[#allocation2 + $0x188] sm:$0xf]  ;;  %v2094_v47 = vld [vmem:[#allocation2 + $0x190] sm:$0xf0] }
 0x130   :  { %1208 = vmatpush.bf16.msra.mxu0 %v1634_v12  ;;  %v1866_v11 = vor.u32 %v2103_v53, %v1865_v6  ;;  %v1661_v12 = vld [vmem:[#allocation2 + $0x38] sm:$0xf]  ;;  %v1925_v14 = vld [vmem:[#allocation2 + $0x248] sm:$0xf]  ;;  %v2118_v40 = vld [vmem:[#allocation2 + $0x250] sm:$0xf0] }
 0x131   :  { %1221 = vmatpush.bf16.msra.mxu1 %v1730_v17  ;;  %v2076_v17 = vld [vmem:[#allocation2 + $0x100] sm:$0xf0]  ;;  %v1926_v50 = vor.u32 %v2118_v40, %v1925_v14  ;;  %s1480_s10 = sshll.u32 %s2275_s1, 4  ;;  %s1482_s13 = sshll.u32 %s2462_s5, 4  ;;  %s1481_s10 = int_to_ptr.vmem [resolvable:$true] %s1480_s10  ;;  %s1483_s13 = int_to_ptr.hbm [resolvable:$true] %s1482_s13 }
 0x132   :  { %1234 = vmatpush.bf16.msra.mxu2 %v1826_v18  ;;  %v1853_v18 = vld [vmem:[#allocation2 + $0x1b8] sm:$0xf]  ;;  %v621_v0 = vld [vmem:[#allocation7 + $0x6] ss:$8 sm:$0x7] }
 0x133   :  { %1247 = vmatpush.bf16.msra.mxu3 %v1922_v21  ;;  %1209 = vmatmul.bf16.vlgmr.msra.gmra.mxu0 %v2392_v62  ;;  %v2124_v21 = vld [vmem:[#allocation2 + $0x280] sm:$0xf0]  ;;  %v628_v52 = vperm.slane %v621_v0, 0 }
 0x134   :  { %1253 = vmatpush.bf16.msrb.mxu0 %v1722_v22  ;;  %1222 = vmatmul.bf16.vlgmr.msra.gmra.mxu1 %v2402_v49  ;;  %v1662_v22 = vor.u32 %v2052_v13, %v1661_v12 }
 0x135   :  { %1266 = vmatpush.bf16.msrb.mxu1 %v1818_v23  ;;  %1235 = vmatmul.bf16.vlgmr.msra.gmra.mxu2 %v2387_v59  ;;  %v1758_v23 = vor.u32 %v2076_v17, %v1757_v15 }
 0x136   :  { %1279 = vmatpush.bf16.msrb.mxu2 %v1914_v24  ;;  %1248 = vmatmul.bf16.vlgmr.msra.gmra.mxu3 %v2397_v63  ;;  %v1854_v24 = vor.u32 %v2100_v19, %v1853_v18 }
 0x137   :  { %1292 = vmatpush.bf16.msrb.mxu3 %v2010_v28  ;;  %v1950_v28 = vor.u32 %v2124_v21, %v1949_v20 }
 0x138   :  { %1254 = vmatpush.bf16.msrb.mxu0 %v1710_v35  ;;  %v1650_v35 = vor.u32 %v2049_v26, %v1649_v25 }
 0x139   :  { %1267 = vmatpush.bf16.msrb.mxu1 %v1806_v37  ;;  %v1746_v37 = vor.u32 %v2073_v29, %v1745_v27 }
 0x13a   :  { %1280 = vmatpush.bf16.msrb.mxu2 %v1902_v38  ;;  %v1842_v38 = vor.u32 %v2097_v31, %v1841_v30 }
 0x13b   :  { %1293 = vmatpush.bf16.msrb.mxu3 %v1998_v44  ;;  %v1938_v44 = vor.u32 %v2121_v34, %v1937_v32 }
 0x13c   :  { %1255 = vmatpush.bf16.msrb.mxu0 %v1698_v42  ;;  %v1638_v42 = vor.u32 %v2046_v41, %v1637_v39 }
 0x13d   :  { %1268 = vmatpush.bf16.msrb.mxu1 %v1794_v10  ;;  %v1734_v10 = vor.u32 %v2070_v45, %v1733_v43 }
 0x13e   :  { %1281 = vmatpush.bf16.msrb.mxu2 %v1890_v48  ;;  %v1830_v48 = vor.u32 %v2094_v47, %v1829_v46 }
 0x13f   :  { %1294 = vmatpush.bf16.msrb.mxu3 %v1986_v58 }
 0x140   :  { %1256 = vmatpush.bf16.msrb.mxu0 %v1686_v1 }
 0x141   :  { %1269 = vmatpush.bf16.msrb.mxu1 %v1782_v33 }
 0x142   :  { %1282 = vmatpush.bf16.msrb.mxu2 %v1878_v2 }
 0x143   :  { %1295 = vmatpush.bf16.msrb.mxu3 %v1974_v4 }
 0x144   :  { %1257 = vmatpush.bf16.msrb.mxu0 %v1674_v8 }
 0x145   :  { %1270 = vmatpush.bf16.msrb.mxu1 %v1770_v9 }
 0x146   :  { %1283 = vmatpush.bf16.msrb.mxu2 %v1866_v11 }
 0x147   :  { %1296 = vmatpush.bf16.msrb.mxu3 %v1962_v16 }
 0x148   :  { %1258 = vmatpush.bf16.msrb.mxu0 %v1662_v22 }
 0x149   :  { %1271 = vmatpush.bf16.msrb.mxu1 %v1758_v23 }
 0x14a   :  { %1284 = vmatpush.bf16.msrb.mxu2 %v1854_v24 }
 0x14b   :  { %1297 = vmatpush.bf16.msrb.mxu3 %v1950_v28 }
 0x14c   :  { %1259 = vmatpush.bf16.msrb.mxu0 %v1650_v35 }
 0x14d   :  { %1272 = vmatpush.bf16.msrb.mxu1 %v1746_v37 }
 0x14e   :  { %1285 = vmatpush.bf16.msrb.mxu2 %v1842_v38 }
 0x14f   :  { %1298 = vmatpush.bf16.msrb.mxu3 %v1938_v44  ;;  %v630_v44 = vperm.slane %v621_v0, 2 }
 0x150   :  { %1260 = vmatpush.bf16.msrb.mxu0 %v1638_v42 }
 0x151   :  { %1273 = vmatpush.bf16.msrb.mxu1 %v1734_v10 }
 0x152   :  { %1286 = vmatpush.bf16.msrb.mxu2 %v1830_v48 }
 0x153   :  { %1299 = vmatpush.bf16.msrb.mxu3 %v1926_v50  ;;  %1261 = vmatmul.bf16.vlgmr.msrb.gmra.mxu0 %v2392_v62  ;;  %v629_v62 = vperm.slane %v621_v0, 1 }
 0x154   :  { %1274 = vmatmul.bf16.vlgmr.msrb.gmra.mxu1 %v2402_v49  ;;  %v1306_v49 = vld [vmem:[#allocation7 + $0x7] ss:$8 sm:$0x7] }
 0x155   :  { %1287 = vmatmul.bf16.vlgmr.msrb.gmra.mxu2 %v2387_v59  ;;  %v1312_v5 = vperm.slane %v1306_v49, 0  ;;  %v1313_v7 = vperm.slane %v1306_v49, 1 }
 0x156   :  { %1300 = vmatmul.bf16.vlgmr.msrb.gmra.mxu3 %v2397_v63 }
 0x180   :  { %v625_v33 = vpop.permute.xlu0 %624 }
 0x181   :  { %v634_v56 = vmul.f32 %v628_v52, %v625_v33  ;;  %v635_v4 = vmul.f32 %v629_v62, %v625_v33  ;;  %v636_v40 = vmul.f32 %v630_v44, %v625_v33 }
 0x18a   :  { %v1309_v63 = vpop.permute.xlu0 %1308 }
 0x18b   :  { %v1318_v8 = vmul.f32 %v1312_v5, %v1309_v63  ;;  %v1319_v13 = vmul.f32 %v1313_v7, %v1309_v63 }
 0x190   :  { %v1158_v51 = vpop.f32.mrf.mxu0 }
 0x191   :  { %v1171_v57 = vpop.f32.mrf.mxu1  ;;  %v1159_v54 = vadd.f32 %v1158_v51, %v634_v56 }
 0x193   :  { %v1172_v3 = vadd.f32 %v1171_v57, %v1159_v54 }
 0x198   :  { %v1184_v58 = vpop.f32.mrf.mxu2  ;;  %v1160_v61 = vpop.f32.mrf.mxu0 }
 0x199   :  { %v1197_v60 = vpop.f32.mrf.mxu3  ;;  %v1173_v55 = vpop.f32.mrf.mxu1  ;;  %v1185_v59 = vadd.f32 %v1184_v58, %v1172_v3 }
 0x19a   :  { %v1314_v55 = vperm.slane %v1306_v49, 2 }
 0x19b   :  { %v1198_v9 = vadd.f32 %v1197_v60, %v1185_v59 }
 0x19c   :  { %v1320_v33 = vmul.f32 %v1314_v55, %v1309_v63  ;;  %v1325_v55 = vld [vmem:[#allocation7 + $0x2] ss:$8 sm:$0x7] }
 0x19d   :  { %v2419_v17 = vadd.f32 %v1318_v8, %v1198_v9 }
 0x19f   :  { %v1328_v22 = vrot.slane %v2419_v17, 4  ;;  %v1346_v23 = vmul.f32 %v2419_v17, %v2419_v17 }
 0x1a0   :  { %v1186_v1 = vpop.f32.mrf.mxu2 }
 0x1a1   :  { %v1199_v2 = vpop.f32.mrf.mxu3  ;;  %v1329_v30 = vadd.f32 %v1328_v22, %v2419_v17  ;;  %v1349_v31 = vrot.slane %v1346_v23, 4 }
 0x1a3   :  { %v1330_v38 = vrot.slane %v1329_v30, 2  ;;  %v1350_v39 = vadd.f32 %v1349_v31, %v1346_v23 }
 0x1a5   :  { %v1331_v45 = vadd.f32 %v1330_v38, %v1329_v30  ;;  %v1351_v46 = vrot.slane %v1350_v39, 2 }
 0x1a7   :  { %v1332_v42 = vrot.slane %v1331_v45, 1  ;;  %v1352_v10 = vadd.f32 %v1351_v46, %v1350_v39 }
 0x1a9   :  { %v1333_v60 = vadd.f32 %v1332_v42, %v1331_v45  ;;  %v1353_v61 = vrot.slane %v1352_v10, 1 }
 0x1ab   :  { %v1354_v2 = vadd.f32 %v1353_v61, %v1352_v10  ;;  %v2435_v54 = vmul.f32 0.125, %v1333_v60 }
 0x1ad   :  { %v1373_v49 = vmul.f32 %v2435_v54, %v2435_v54 }
 0x1b0   :  { %v1210_v6 = vpop.f32.mrf.mxu0 }
 0x1b1   :  { %v1211_v53 = vadd.f32 %v1210_v6, %v635_v4  ;;  %v1223_v36 = vpop.f32.mrf.mxu1 }
 0x1b3   :  { %v1224_v11 = vadd.f32 %v1223_v36, %v1211_v53  ;;  %v1370_v53 = vmul.f32 0.125, %v1354_v2 }
 0x1b5   :  { %v1376_v63 = vsub.f32 %v1370_v53, %v1373_v49  ;;  %v1327_v49 = vld [vmem:[#allocation7 + $0x3] ss:$8 sm:$0x7] }
 0x1b8   :  { %v1236_v12 = vpop.f32.mrf.mxu2  ;;  %v1212_v19 = vpop.f32.mrf.mxu0 }
 0x1b9   :  { %v1237_v15 = vadd.f32 %v1236_v12, %v1224_v11  ;;  %v1249_v16 = vpop.f32.mrf.mxu3  ;;  %v1225_v20 = vpop.f32.mrf.mxu1  ;;  %v1379_v19 = vadd.f32 1e-05, %v1376_v63 }
 0x1bb   :  { %v1250_v18 = vadd.f32 %v1249_v16, %v1237_v15  ;;  %vm1388_vm2 = vweird.f32 %v1379_v19 }
 0x1bd   :  { %v2421_v21 = vadd.f32 %v1319_v13, %v1250_v18 }
 0x1bf   :  { %v1334_v24 = vrot.slane %v2421_v21, 4  ;;  %v1347_v25 = vmul.f32 %v2421_v21, %v2421_v21 }
 0x1c0   :  { %v1238_v26 = vpop.f32.mrf.mxu2 }
 0x1c1   :  { %v1335_v27 = vadd.f32 %v1334_v24, %v2421_v21  ;;  %v1355_v28 = vrot.slane %v1347_v25, 4  ;;  %v1251_v29 = vpop.f32.mrf.mxu3 }
 0x1c3   :  { %v1336_v32 = vrot.slane %v1335_v27, 2  ;;  %v1356_v34 = vadd.f32 %v1355_v28, %v1347_v25 }
 0x1c5   :  { %v1337_v35 = vadd.f32 %v1336_v32, %v1335_v27  ;;  %v1357_v37 = vrot.slane %v1356_v34, 2 }
 0x1c7   :  { %v1338_v41 = vrot.slane %v1337_v35, 1  ;;  %v1358_v43 = vadd.f32 %v1357_v37, %v1356_v34 }
 0x1c9   :  { %v1339_v47 = vadd.f32 %v1338_v41, %v1337_v35  ;;  %v1359_v14 = vrot.slane %v1358_v43, 1 }
 0x1cb   :  { %v1360_v50 = vadd.f32 %v1359_v14, %v1358_v43  ;;  %v2431_v57 = vmul.f32 0.125, %v1339_v47 }
 0x1cd   :  { %v1371_v52 = vmul.f32 0.125, %v1360_v50  ;;  %v1374_v0 = vmul.f32 %v2431_v57, %v2431_v57 }
 0x1cf   :  { %v1377_v5 = vsub.f32 %v1371_v52, %v1374_v0 }
 0x1d0   :  { %v1262_v48 = vpop.f32.mrf.mxu0 }
 0x1d1   :  { %v1275_v51 = vpop.f32.mrf.mxu1  ;;  %v1263_v58 = vadd.f32 %v1262_v48, %v636_v40  ;;  %v1380_v7 = vadd.f32 1e-05, %v1377_v5 }
 0x1d3   :  { %v1276_v1 = vadd.f32 %v1275_v51, %v1263_v58  ;;  %2158 = vrsqrt.f32 %v1380_v7  ;;  %vm1398_vm15 = vweird.f32 %v1380_v7 }
 0x1d4   :  { %2160 = vrsqrt.f32 %v1379_v19 }
 0x1d8   :  { %v1288_v56 = vpop.f32.mrf.mxu2  ;;  %v1264_v4 = vpop.f32.mrf.mxu0 }
 0x1d9   :  { %v1289_v62 = vadd.f32 %v1288_v56, %v1276_v1  ;;  %v1301_v3 = vpop.f32.mrf.mxu3  ;;  %v1277_v59 = vpop.f32.mrf.mxu1 }
 0x1da   :  { %v2159_v25 = vpop.eup %2158 }
 0x1db   :  { %v1302_v6 = vadd.f32 %v1301_v3, %v1289_v62  ;;  %v1393_v30 = vmul.f32 %v2159_v25, %v1380_v7  ;;  %v2161_v34 = vpop.eup %2160  ;;  %vm1399_vm0 = vweird.f32 %v2159_v25 }
 0x1dc   :  { %v1383_v39 = vmul.f32 %v2161_v34, %v1379_v19  ;;  %vm1400_vm1 = vmor %vm1398_vm15, %vm1399_vm0  ;;  %vm1389_vm3 = vweird.f32 %v2161_v34 }
 0x1dd   :  { %v2439_v36 = vadd.f32 %v1320_v33, %v1302_v6  ;;  %v1394_v37 = vmul.f32 %v2159_v25, %v1393_v30  ;;  %vm1390_vm5 = vmor %vm1388_vm2, %vm1389_vm3 }
 0x1de   :  { %v1384_v43 = vmul.f32 %v2161_v34, %v1383_v39 }
 0x1df   :  { %v1340_v8 = vrot.slane %v2439_v36, 4  ;;  %v1348_v9 = vmul.f32 %v2439_v36, %v2439_v36  ;;  %v1395_v41 = vmul.f32 0.5, %v1394_v37 }
 0x1e0   :  { %v1290_v11 = vpop.f32.mrf.mxu2  ;;  %v1385_v46 = vmul.f32 0.5, %v1384_v43 }
 0x1e1   :  { %v1341_v12 = vadd.f32 %v1340_v8, %v2439_v36  ;;  %v1361_v13 = vrot.slane %v1348_v9, 4  ;;  %v1303_v15 = vpop.f32.mrf.mxu3  ;;  %v1396_v44 = vsub.f32 1.5, %v1395_v41  ;;  %v1457_v11 = vld [vmem:[#allocation7 + $0x4] ss:$8 sm:$0x7] }
 0x1e2   :  { %v1386_v42 = vsub.f32 1.5, %v1385_v46 }
 0x1e3   :  { %v1342_v16 = vrot.slane %v1341_v12, 2  ;;  %v1362_v18 = vadd.f32 %v1361_v13, %v1348_v9  ;;  %v1397_v14 = vmul.f32 %v2159_v25, %v1396_v44 }
 0x1e4   :  { %v1387_v51 = vmul.f32 %v2161_v34, %v1386_v42 }
 0x1e5   :  { %v1343_v20 = vadd.f32 %v1342_v16, %v1341_v12  ;;  %v1363_v22 = vrot.slane %v1362_v18, 2  ;;  %v1401_v48 = vsel %vm1400_vm1, %v2159_v25, %v1397_v14 }
 0x1e6   :  { %v1415_v60 = vrot.slane %v1401_v48, 7  ;;  %v1391_v52 = vsel %vm1390_vm5, %v2161_v34, %v1387_v51 }
 0x1e7   :  { %v1344_v23 = vrot.slane %v1343_v20, 1  ;;  %v1364_v24 = vadd.f32 %v1363_v22, %v1362_v18  ;;  %v1459_v18 = vperm.slane %v1457_v11, 0  ;;  %v1460_v22 = vperm.slane %v1457_v11, 1 }
 0x1e8   :  { %v1417_v1 = vsel %vm429_vm10, %v1391_v52, %v1415_v60 }
 0x1e9   :  { %v1365_v26 = vrot.slane %v1364_v24, 1  ;;  %v1345_v27 = vadd.f32 %v1344_v23, %v1343_v20 }
 0x1eb   :  { %v1366_v28 = vadd.f32 %v1365_v26, %v1364_v24  ;;  %v1369_v29 = vmul.f32 0.125, %v1345_v27  ;;  %v1461_v26 = vperm.slane %v1457_v11, 2 }
 0x1ed   :  { %v1372_v31 = vmul.f32 0.125, %v1366_v28  ;;  %v1375_v32 = vmul.f32 %v1369_v29, %v1369_v29 }
 0x1ef   :  { %v1378_v35 = vsub.f32 %v1372_v31, %v1375_v32 }
 0x1f1   :  { %v1381_v38 = vadd.f32 1e-05, %v1378_v35 }
 0x1f3   :  { %2162 = vrsqrt.f32 %v1381_v38  ;;  %vm1408_vm6 = vweird.f32 %v1381_v38 }
 0x1f9   :  { %v2163_v45 = vpop.eup %2162 }
 0x1fa   :  { %v1403_v47 = vmul.f32 %v2163_v45, %v1381_v38  ;;  %vm1409_vm4 = vweird.f32 %v2163_v45 }
 0x1fb   :  { %vm1410_vm7 = vmor %vm1408_vm6, %vm1409_vm4 }
 0x1fc   :  { %v1404_v40 = vmul.f32 %v2163_v45, %v1403_v47 }
 0x1fe   :  { %v1405_v10 = vmul.f32 0.5, %v1404_v40 }
 0x200   :  { %v1406_v50 = vsub.f32 1.5, %v1405_v10 }
 0x202   :  { %v1407_v58 = vmul.f32 %v2163_v45, %v1406_v50 }
 0x204   :  { %v1411_v61 = vsel %vm1410_vm7, %v2163_v45, %v1407_v58 }
 0x205   :  { %v1416_v0 = vrot.slane %v1411_v61, 6 }
 0x207   :  { %v1418_v2 = vsel %vm433_vm14, %v1417_v1, %v1416_v0 }
 0x208   :  { %v1420_v56 = vmul.f32 %v1418_v2, %v1325_v55 }
 0x20a   :  { %v1422_v33 = vperm.slane %v1420_v56, 0  ;;  %v1423_v62 = vperm.slane %v1420_v56, 1  ;;  %v1424_v3 = vperm.slane %v1420_v56, 2 }
 0x20c   :  { %v1429_v4 = vmul.f32 %v1423_v62, %v2431_v57  ;;  %v1430_v59 = vmul.f32 %v1424_v3, %v1369_v29  ;;  %v1428_v5 = vmul.f32 %v1422_v33, %v2435_v54  ;;  %v1440_v63 = vmul.f32 %v1422_v33, %v2419_v17 }
 0x20d   :  { %v1441_v12 = vmul.f32 %v1423_v62, %v2421_v21  ;;  %v1442_v13 = vmul.f32 %v1424_v3, %v2439_v36  ;;  %v1472_v21 = vld [vmem:[#allocation7 + $0x5] ss:$0 sm:$0xff] }
 0x20e   :  { %v1434_v6 = vrot.slane %v1429_v4, 7  ;;  %v1435_v53 = vrot.slane %v1430_v59, 6 }
 0x210   :  { %v1436_v7 = vsel %vm429_vm10, %v1428_v5, %v1434_v6 }
 0x211   :  { %v1437_v8 = vsel %vm433_vm14, %v1436_v7, %v1435_v53 }
 0x212   :  { %v1439_v9 = vsub.f32 %v1327_v49, %v1437_v8 }
 0x214   :  { %v1444_v15 = vperm.slane %v1439_v9, 0  ;;  %v1445_v57 = vperm.slane %v1439_v9, 1  ;;  %v1446_v16 = vperm.slane %v1439_v9, 2 }
 0x216   :  { %v1450_v54 = vadd.f32 %v1444_v15, %v1440_v63  ;;  %v1451_v19 = vadd.f32 %v1445_v57, %v1441_v12  ;;  %v1452_v20 = vadd.f32 %v1446_v16, %v1442_v13 }
 0x218   :  { %v1453_v23 = vmax.f32 %v1450_v54, 0.0  ;;  %v1454_v24 = vmax.f32 %v1451_v19, 0.0  ;;  %v1455_v25 = vmax.f32 %v1452_v20, 0.0 }
 0x21a   :  { %v1465_v27 = vmul.f32 %v1459_v18, %v1453_v23  ;;  %v1466_v28 = vmul.f32 %v1460_v22, %v1454_v24  ;;  %v1467_v29 = vmul.f32 %v1461_v26, %v1455_v25 }
 0x21c   :  { %v1468_v17 = vadd.f32 %v1466_v28, %v1465_v27 }
 0x21e   :  { %v1469_v30 = vadd.f32 %v1468_v17, %v1467_v29 }
 0x220   :  { %1470 = vadd.xlane.f32.xlu1 %v1469_v30 }
 0x293   :  { %v1471_v36 = vpop.xlane.xlu1 %1470 }
 0x294   :  { %v1473_v31 = vadd.f32 %v1472_v21, %v1471_v36 }
 0x296   :  { %1474 = vst [vmem:[#allocation9] sm:$0xff] %v1473_v31 }
 0x297   :  { %1485 = dma.vmem_to_hbm [thread:$0]  %s1481_s10, 128, %s1483_s13, [#allocation6]  }
 0x298   :  { %2266 = dma.done.wait [#allocation6], 128  }
 0x299   :  { %2267 = vsyncadd [#allocation6], 4294967168 }
 0x29a   :  { %1490 = vsyncpa [#allocation5], 1 }
 0x29b   :  { %1491 = vsyncpa [#allocation8], 1 }
 0x29c   :  { %1492 = vsyncpa [#allocation6], 1 }
 0x29d   :  { %1493 = vsyncmov [#allocation3] }
 0x2a0   :  { %s1494_s14 = vpop.sfrf %1493 }
 0x2a1   :  { %p2011_p0 = scmp.ne.s32.totalorder %s1494_s14, 0 }
 0x2a3   :  { %1498 = shalt.err (%p2011_p0)  }

</bundles_post_ra>
